<compile_context>
chip_gen: v7x
topology: tpu7x:2x2x1
jax: 0.10.0
libtpu: 0.0.40
codegen_flags: <defaults>
</compile_context>

<pallas_src>
import math

import numpy as np
import jax
import jax.numpy as jnp
from jax.experimental import pallas as pl
from jax.experimental.pallas import tpu as pltpu


def _decoder_kernel(seq_ref, wx_ref, ws_ref, b_ref,
                    w_out_ref, b_out_ref, table_ref,
                    dists_ref, commit_ref, px_ref):
    T = seq_ref.shape[0]
    sixH = ws_ref.shape[1]
    H = sixH // 6
    Cpad = w_out_ref.shape[1]
    n_pad = table_ref.shape[0]

    # ---- Hoisted out of the recurrence -------------------------------------
    # All T input projections in one M=T MXU dot, bias fused (8x sublane utilization
    # and one less MXU op on every step of the serial chain).
    px_ref[...] = (jnp.dot(seq_ref[...], wx_ref[...],
                           preferred_element_type=jnp.float32)
                   + b_ref[...])

    # Iotas computed once, reused every step.
    cls_idx = jax.lax.broadcasted_iota(jnp.int32, (1, Cpad), 1)
    emb_rows = jax.lax.broadcasted_iota(jnp.int32, (1, n_pad), 1)

    def step(t, carry):
        h, c, fb = carry    # fb: (1, 6H) feedback-table row (prev_embed @ We, preprojected)

        # proj = px[t] + h @ Ws + fb.  Ws has a zero 6th H-block so the highway input
        # projection comes only from the input/feedback path (matches reference).
        proj = (px_ref[pl.ds(t, 1), :]
                + jnp.dot(h, ws_ref[...], preferred_element_type=jnp.float32)
                + fb)                                              # (1, 6H)

        # Gate layout (permuted in the wrapper): [i, f, o, hg | m | hp]
        sig = jax.nn.sigmoid(proj[:, :4 * H])                      # 4H lanes only
        ig = sig[:, 0 * H:1 * H]
        fg = sig[:, 1 * H:2 * H]
        og = sig[:, 2 * H:3 * H]
        hg = sig[:, 3 * H:4 * H]
        mi = jnp.tanh(proj[:, 4 * H:5 * H])                        # H lanes only
        hp = proj[:, 5 * H:6 * H]                                  # linear highway proj

        c_new = ig * mi + fg * c
        h_lstm = og * jnp.tanh(c_new)
        h_new = hg * h_lstm + (1.0 - hg) * hp                      # highway

        # pred_dist = self.out(h)   (lane-dense padded head; pad cols get -1e30 bias)
        pred = (jnp.dot(h_new, w_out_ref[...],
                        preferred_element_type=jnp.float32)
                + b_out_ref[...])                                  # (1, Cpad)
        dists_ref[pl.ds(t, 1), :] = pred

        # best_ind = argmax(pred[:, 1:]) + 1 (first occurrence, like torch.max; the
        # softmax is monotonic so it is dropped). NOTE: a NaN logit would change the
        # tie-break vs torch; not expected in eval.
        masked = jnp.where(cls_idx >= 1, pred, -jnp.inf)
        mx = jnp.max(masked, axis=1, keepdims=True)
        cand = jnp.where(masked == mx, cls_idx, Cpad)
        best = jnp.min(cand, axis=1, keepdims=True)                # (1, 1) int32
        commit_ref[pl.ds(t, 1), :] = best

        # Feedback row for step t+1: obj_embed.weight[best + 1] @ We, read from the
        # precomputed table via a one-hot dot (runs in the slack behind step t+1's
        # state dot).  best+1 <= C < n_pad, so padded (zero) rows are never selected.
        onehot = (emb_rows == (best + 1)).astype(jnp.float32)      # (1, n_pad)
        fb_new = jnp.dot(onehot, table_ref[...],
                         preferred_element_type=jnp.float32)       # (1, 6H)

        return h_new, c_new, fb_new

    # initial_state is None -> zeros; previous_embed = obj_embed.weight[0] ('start'),
    # already pre-projected into table row 0.
    h0 = jnp.zeros((1, H), jnp.float32)
    c0 = jnp.zeros((1, H), jnp.float32)
    fb0 = table_ref[0:1, :]
    jax.lax.fori_loop(0, T, step, (h0, c0, fb0),
                      unroll=(True if T <= 16 else 4))


def decoder_rnn_forward(seq, params):
    """seq: (T, inputs_dim) float32; returns (out_dists (T, C), out_commitments (T,))."""
    T, inputs_dim = seq.shape
    w_in, b_in, w_st, b_st, w_out, b_out, embed_w = params
    input_size, sixH = w_in.shape
    H = sixH // 6
    C = b_out.shape[1]
    embed_dim = embed_w.shape[1]
    assert input_size == inputs_dim + embed_dim

    f32 = jnp.float32

    # One-time weight fusion / split (outside the kernel):
    #   w_in (input_size, 6H) -> wx (inputs_dim, 6H), we (embed_dim, 6H)
    #   w_st (H, 5H)          -> ws (H, 6H) with a zero 6th H-block
    #   bias b = b_in + pad(b_st)   (fused into the pre-loop px matmul)
    wx = w_in[:inputs_dim, :]
    we = w_in[inputs_dim:, :]
    ws = jnp.concatenate([w_st, jnp.zeros((H, H), f32)], axis=1)
    b = b_in + jnp.concatenate([b_st, jnp.zeros((1, H), f32)], axis=1)

    # Gate permutation: reference block order [i, f, m, o, hg, hp] -> [i, f, o, hg, m, hp]
    # so the kernel's sigmoid covers one contiguous 4H slab and tanh one H slab.
    perm = np.concatenate([np.arange(0 * H, 2 * H),     # i, f
                           np.arange(3 * H, 5 * H),     # o, hg
                           np.arange(2 * H, 3 * H),     # m
                           np.arange(5 * H, 6 * H)])    # hp
    wx = wx[:, perm]
    we = we[:, perm]
    ws = ws[:, perm]
    b = b[:, perm]

    # Pre-projected feedback table: row k = obj_embed.weight[k] @ We  -> (n_embed, 6H),
    # rows padded (zeros) to a sublane multiple for a clean VMEM layout.
    table = jnp.dot(embed_w, we)
    n_embed = table.shape[0]
    n_pad = max(8, int(math.ceil(n_embed / 8)) * 8)
    table_p = jnp.concatenate(
        [table, jnp.zeros((n_pad - n_embed, sixH), f32)], axis=0)

    # Lane-dense classifier head: pad C up to a multiple of 128; padded logits get a
    # huge negative bias so they never win the argmax.  Wrapper slices back to C.
    Cpad = max(128, pl.cdiv(C, 128) * 128)
    w_out_p = jnp.concatenate([w_out, jnp.zeros((H, Cpad - C), f32)], axis=1)
    b_out_p = jnp.concatenate([b_out, jnp.full((1, Cpad - C), -1e30, f32)], axis=1)

    def const(shape):
        return pl.BlockSpec(shape, lambda i, _s=shape: tuple(0 for _ in _s))

    out_dists, out_commit = pl.pallas_call(
        _decoder_kernel,
        grid=(1,),                                      # single invocation; loop in-kernel
        in_specs=[
            const(seq.shape),
            const(wx.shape), const(ws.shape), const(b.shape),
            const(w_out_p.shape), const(b_out_p.shape),
            const(table_p.shape),
        ],
        out_specs=[
            pl.BlockSpec((T, Cpad), lambda i: (0, 0)),
            pl.BlockSpec((T, 1), lambda i: (0, 0)),
        ],
        out_shape=(
            jax.ShapeDtypeStruct((T, Cpad), jnp.float32),
            jax.ShapeDtypeStruct((T, 1), jnp.int32),
        ),
        scratch_shapes=[pltpu.VMEM((T, sixH), jnp.float32)],   # hoisted input projection
        compiler_params=pltpu.CompilerParams(
            dimension_semantics=("arbitrary",)),
    )(seq, wx, ws, b, w_out_p, b_out_p, table_p)

    return out_dists[:, :C], out_commit[:, 0]


def make_params(key, *, num_classes, inputs_dim, hidden_dim, embed_dim=100):
    """Deterministic synthetic parameters (shapes match DecoderRNN.__init__)."""
    input_size = inputs_dim + embed_dim
    ks = jax.random.split(key, 5)
    f32 = jnp.float32
    # input_linearity: torch weight (6H, input_size) -> stored transposed (input_size, 6H)
    w_in = (jax.random.normal(ks[0], (input_size, 6 * hidden_dim), f32)
            / math.sqrt(input_size))
    b_in = (jax.random.normal(ks[1], (1, 6 * hidden_dim), f32) * 0.01)
    # state_linearity: (5H, H) -> (H, 5H); bias zeros with forget-gate block set to 1
    w_st = (jax.random.normal(ks[2], (hidden_dim, 5 * hidden_dim), f32)
            / math.sqrt(hidden_dim))
    b_st = jnp.zeros((1, 5 * hidden_dim), f32)
    b_st = b_st.at[:, hidden_dim:2 * hidden_dim].set(1.0)
    # out: (C, H) -> (H, C)
    w_out = (jax.random.normal(ks[3], (hidden_dim, num_classes), f32)
             / math.sqrt(hidden_dim))
    b_out = jnp.zeros((1, num_classes), f32)
    # obj_embed: ['start'] + classes  ->  (num_classes + 1, 100)
    embed_w = jax.random.normal(ks[4], (num_classes + 1, embed_dim), f32)
    return (w_in, b_in, w_st, b_st, w_out, b_out, embed_w)


if __name__ == "__main__":
    # Small shapes: 8 classes, embed_dim=100 (fixed by obj_edge_vectors), inputs_dim=28
    # -> input_size=128, hidden_dim=32, T=8 timesteps (batch_sizes all 1, eval decode).
    num_classes = 8
    inputs_dim = 28
    hidden_dim = 32
    T = 8

    key = jax.random.PRNGKey(0)
    k_seq, k_par = jax.random.split(key)
    seq = jax.random.normal(k_seq, (T, inputs_dim), jnp.float32)
    params = make_params(k_par, num_classes=num_classes,
                         inputs_dim=inputs_dim, hidden_dim=hidden_dim)

    out_dists, out_commitments = decoder_rnn_forward(seq, params)
    jax.block_until_ready((out_dists, out_commitments))

    assert out_dists.shape == (T, num_classes)
    assert out_commitments.shape == (T,)
    print("KERNEL_OK")
</pallas_src>

<mosaic_0001>
module attributes {stable_mosaic.version = 11 : i64} {
  func.func @_decoder_kernel(%arg0: i32, %arg1: memref<8x28xf32, #tpu.memory_space<vmem>>, %arg2: memref<28x192xf32, #tpu.memory_space<vmem>>, %arg3: memref<32x192xf32, #tpu.memory_space<vmem>>, %arg4: memref<1x192xf32, #tpu.memory_space<vmem>>, %arg5: memref<32x128xf32, #tpu.memory_space<vmem>>, %arg6: memref<1x128xf32, #tpu.memory_space<vmem>>, %arg7: memref<16x192xf32, #tpu.memory_space<vmem>>, %arg8: memref<8x128xf32, #tpu.memory_space<vmem>>, %arg9: memref<8x1xi32, #tpu.memory_space<vmem>>, %arg10: memref<8x192xf32, #tpu.memory_space<vmem>>) attributes {dimension_semantics = [#tpu.dimension_semantics<arbitrary>], iteration_bounds = array<i64: 1>, scalar_prefetch = 0 : i64, scratch_operands = 1 : i64, tpu.core_type = #tpu.core_type<tc>, window_params = [{pipeline_mode = #tpu.pipeline_mode<synchronous>, transform_indices = @transform_0, window_bounds = array<i64: 8, 28>}, {pipeline_mode = #tpu.pipeline_mode<synchronous>, transform_indices = @transform_1, window_bounds = array<i64: 28, 192>}, {pipeline_mode = #tpu.pipeline_mode<synchronous>, transform_indices = @transform_2, window_bounds = array<i64: 32, 192>}, {pipeline_mode = #tpu.pipeline_mode<synchronous>, transform_indices = @transform_3, window_bounds = array<i64: 1, 192>}, {pipeline_mode = #tpu.pipeline_mode<synchronous>, transform_indices = @transform_4, window_bounds = array<i64: 32, 128>}, {pipeline_mode = #tpu.pipeline_mode<synchronous>, transform_indices = @transform_5, window_bounds = array<i64: 1, 128>}, {pipeline_mode = #tpu.pipeline_mode<synchronous>, transform_indices = @transform_6, window_bounds = array<i64: 16, 192>}, {pipeline_mode = #tpu.pipeline_mode<synchronous>, transform_indices = @transform_7, window_bounds = array<i64: 8, 128>}, {pipeline_mode = #tpu.pipeline_mode<synchronous>, transform_indices = @transform_8, window_bounds = array<i64: 8, 1>}]} {
    %c0 = arith.constant 0 : index
    %c0_0 = arith.constant 0 : index
    %0 = vector.load %arg1[%c0, %c0_0] : memref<8x28xf32, #tpu.memory_space<vmem>>, vector<8x28xf32>
    %c0_1 = arith.constant 0 : index
    %c0_2 = arith.constant 0 : index
    %1 = vector.load %arg2[%c0_1, %c0_2] : memref<28x192xf32, #tpu.memory_space<vmem>>, vector<28x192xf32>
    %cst = arith.constant dense<0.000000e+00> : vector<8x192xf32>
    %2 = tpu.matmul %0, %1, %cst {dimension_numbers = #tpu.dot_dimension_numbers<[1], [0], [0], [1], [0, 0, 1, 1], [], []>} : vector<8x28xf32>, vector<28x192xf32>, vector<8x192xf32> -> vector<8x192xf32>
    %c0_3 = arith.constant 0 : index
    %c0_4 = arith.constant 0 : index
    %3 = vector.load %arg4[%c0_3, %c0_4] : memref<1x192xf32, #tpu.memory_space<vmem>>, vector<1x192xf32>
    %4 = vector.broadcast %3 : vector<1x192xf32> to vector<8x192xf32>
    %5 = arith.addf %2, %4 : vector<8x192xf32>
    %c0_5 = arith.constant 0 : index
    %c0_6 = arith.constant 0 : index
    %6 = vector.load %arg10[%c0_5, %c0_6] : memref<8x192xf32, #tpu.memory_space<vmem>>, vector<8x192xf32>
    tpu.vector_store %arg10[%c0_5, %c0_6], %5 {strides = array<i32>} : memref<8x192xf32, #tpu.memory_space<vmem>>, vector<8x192xf32>,
    %7 = tpu.iota {dimensions = array<i32: 1>} : vector<1x128xi32>
    %8 = tpu.iota {dimensions = array<i32: 1>} : vector<1x16xi32>
    %cst_7 = arith.constant 0.000000e+00 : f32
    %9 = vector.broadcast %cst_7 : f32 to vector<1x32xf32>
    %cst_8 = arith.constant 0.000000e+00 : f32
    %10 = vector.broadcast %cst_8 : f32 to vector<1x32xf32>
    %c0_9 = arith.constant 0 : index
    %c0_10 = arith.constant 0 : index
    %11 = vector.load %arg7[%c0_9, %c0_10] : memref<16x192xf32, #tpu.memory_space<vmem>>, vector<1x192xf32>
    %c0_i32 = arith.constant 0 : i32
    %12 = arith.index_cast %c0_i32 : i32 to index
    %c0_11 = arith.constant 0 : index
    %13 = vector.load %arg10[%12, %c0_11] : memref<8x192xf32, #tpu.memory_space<vmem>>, vector<1x192xf32>
    %c0_12 = arith.constant 0 : index
    %c0_13 = arith.constant 0 : index
    %14 = vector.load %arg3[%c0_12, %c0_13] : memref<32x192xf32, #tpu.memory_space<vmem>>, vector<32x192xf32>
    %cst_14 = arith.constant dense<0.000000e+00> : vector<1x192xf32>
    %15 = tpu.matmul %9, %14, %cst_14 {dimension_numbers = #tpu.dot_dimension_numbers<[1], [0], [0], [1], [0, 0, 1, 1], [], []>} : vector<1x32xf32>, vector<32x192xf32>, vector<1x192xf32> -> vector<1x192xf32>
    %16 = arith.addf %13, %15 : vector<1x192xf32>
    %17 = arith.addf %16, %11 : vector<1x192xf32>
    %18 = vector.extract_strided_slice %17 {offsets = [0, 0], sizes = [1, 128], strides = [1, 1]} : vector<1x192xf32> to vector<1x128xf32>
    %19 = arith.negf %18 : vector<1x128xf32>
    %20 = math.exp %19 : vector<1x128xf32>
    %cst_15 = arith.constant 1.000000e+00 : f32
    %21 = vector.broadcast %cst_15 : f32 to vector<1x128xf32>
    %22 = arith.addf %21, %20 : vector<1x128xf32>
    %23 = arith.divf %21, %22 : vector<1x128xf32>
    %24 = vector.extract_strided_slice %23 {offsets = [0, 0], sizes = [1, 32], strides = [1, 1]} : vector<1x128xf32> to vector<1x32xf32>
    %25 = vector.extract_strided_slice %23 {offsets = [0, 32], sizes = [1, 32], strides = [1, 1]} : vector<1x128xf32> to vector<1x32xf32>
    %26 = vector.extract_strided_slice %23 {offsets = [0, 64], sizes = [1, 32], strides = [1, 1]} : vector<1x128xf32> to vector<1x32xf32>
    %27 = vector.extract_strided_slice %23 {offsets = [0, 96], sizes = [1, 32], strides = [1, 1]} : vector<1x128xf32> to vector<1x32xf32>
    %28 = vector.extract_strided_slice %17 {offsets = [0, 128], sizes = [1, 32], strides = [1, 1]} : vector<1x192xf32> to vector<1x32xf32>
    %29 = math.tanh %28 : vector<1x32xf32>
    %30 = vector.extract_strided_slice %17 {offsets = [0, 160], sizes = [1, 32], strides = [1, 1]} : vector<1x192xf32> to vector<1x32xf32>
    %31 = arith.mulf %24, %29 : vector<1x32xf32>
    %32 = arith.mulf %25, %10 : vector<1x32xf32>
    %33 = arith.addf %31, %32 : vector<1x32xf32>
    %34 = math.tanh %33 : vector<1x32xf32>
    %35 = arith.mulf %26, %34 : vector<1x32xf32>
    %36 = arith.mulf %27, %35 : vector<1x32xf32>
    %cst_16 = arith.constant 1.000000e+00 : f32
    %37 = vector.broadcast %cst_16 : f32 to vector<1x32xf32>
    %38 = arith.subf %37, %27 : vector<1x32xf32>
    %39 = arith.mulf %38, %30 : vector<1x32xf32>
    %40 = arith.addf %36, %39 : vector<1x32xf32>
    %c0_17 = arith.constant 0 : index
    %c0_18 = arith.constant 0 : index
    %41 = vector.load %arg5[%c0_17, %c0_18] : memref<32x128xf32, #tpu.memory_space<vmem>>, vector<32x128xf32>
    %cst_19 = arith.constant dense<0.000000e+00> : vector<1x128xf32>
    %42 = tpu.matmul %40, %41, %cst_19 {dimension_numbers = #tpu.dot_dimension_numbers<[1], [0], [0], [1], [0, 0, 1, 1], [], []>} : vector<1x32xf32>, vector<32x128xf32>, vector<1x128xf32> -> vector<1x128xf32>
    %c0_20 = arith.constant 0 : index
    %c0_21 = arith.constant 0 : index
    %43 = vector.load %arg6[%c0_20, %c0_21] : memref<1x128xf32, #tpu.memory_space<vmem>>, vector<1x128xf32>
    %44 = arith.addf %42, %43 : vector<1x128xf32>
    %45 = arith.index_cast %c0_i32 : i32 to index
    %c0_22 = arith.constant 0 : index
    %46 = vector.load %arg8[%45, %c0_22] : memref<8x128xf32, #tpu.memory_space<vmem>>, vector<1x128xf32>
    tpu.vector_store %arg8[%45, %c0_22], %44 {strides = array<i32>} : memref<8x128xf32, #tpu.memory_space<vmem>>, vector<1x128xf32>,
    %c1_i32 = arith.constant 1 : i32
    %47 = vector.broadcast %c1_i32 : i32 to vector<1x128xi32>
    %48 = arith.cmpi sge, %7, %47 : vector<1x128xi32>
    %cst_23 = arith.constant 0xFF800000 : f32
    %49 = vector.broadcast %cst_23 : f32 to vector<1x128xf32>
    %50 = arith.select %48, %44, %49 : vector<1x128xi1>, vector<1x128xf32>
    %cst_24 = arith.constant dense<0xFF800000> : vector<1xf32>
    %51 = vector.multi_reduction <maximumf>, %50, %cst_24 [1] : vector<1x128xf32> to vector<1xf32>
    %52 = vector.shape_cast %51 : vector<1xf32> to vector<1x1xf32>
    %53 = vector.broadcast %52 : vector<1x1xf32> to vector<1x128xf32>
    %54 = arith.cmpf oeq, %50, %53 : vector<1x128xf32>
    %c128_i32 = arith.constant 128 : i32
    %55 = vector.broadcast %c128_i32 : i32 to vector<1x128xi32>
    %56 = arith.select %54, %7, %55 : vector<1x128xi1>, vector<1x128xi32>
    %cst_25 = arith.constant dense<2147483647> : vector<1xi32>
    %57 = vector.multi_reduction <minsi>, %56, %cst_25 [1] : vector<1x128xi32> to vector<1xi32>
    %58 = vector.shape_cast %57 : vector<1xi32> to vector<1x1xi32>
    %59 = arith.index_cast %c0_i32 : i32 to index
    %c0_26 = arith.constant 0 : index
    %60 = vector.load %arg9[%59, %c0_26] : memref<8x1xi32, #tpu.memory_space<vmem>>, vector<1x1xi32>
    tpu.vector_store %arg9[%59, %c0_26], %58 {strides = array<i32>} : memref<8x1xi32, #tpu.memory_space<vmem>>, vector<1x1xi32>,
    %c1_i32_27 = arith.constant 1 : i32
    %61 = vector.broadcast %c1_i32_27 : i32 to vector<1x1xi32>
    %62 = arith.addi %58, %61 : vector<1x1xi32>
    %63 = vector.broadcast %62 : vector<1x1xi32> to vector<1x16xi32>
    %64 = arith.cmpi eq, %8, %63 : vector<1x16xi32>
    %65 = arith.extui %64 : vector<1x16xi1> to vector<1x16xi32>
    %66 = arith.sitofp %65 : vector<1x16xi32> to vector<1x16xf32>
    %c0_28 = arith.constant 0 : index
    %c0_29 = arith.constant 0 : index
    %67 = vector.load %arg7[%c0_28, %c0_29] : memref<16x192xf32, #tpu.memory_space<vmem>>, vector<16x192xf32>
    %cst_30 = arith.constant dense<0.000000e+00> : vector<1x192xf32>
    %68 = tpu.matmul %66, %67, %cst_30 {dimension_numbers = #tpu.dot_dimension_numbers<[1], [0], [0], [1], [0, 0, 1, 1], [], []>} : vector<1x16xf32>, vector<16x192xf32>, vector<1x192xf32> -> vector<1x192xf32>
    %c1_i32_31 = arith.constant 1 : i32
    %69 = arith.index_cast %c1_i32_31 : i32 to index
    %c0_32 = arith.constant 0 : index
    %70 = vector.load %arg10[%69, %c0_32] : memref<8x192xf32, #tpu.memory_space<vmem>>, vector<1x192xf32>
    %c0_33 = arith.constant 0 : index
    %c0_34 = arith.constant 0 : index
    %71 = vector.load %arg3[%c0_33, %c0_34] : memref<32x192xf32, #tpu.memory_space<vmem>>, vector<32x192xf32>
    %cst_35 = arith.constant dense<0.000000e+00> : vector<1x192xf32>
    %72 = tpu.matmul %40, %71, %cst_35 {dimension_numbers = #tpu.dot_dimension_numbers<[1], [0], [0], [1], [0, 0, 1, 1], [], []>} : vector<1x32xf32>, vector<32x192xf32>, vector<1x192xf32> -> vector<1x192xf32>
    %73 = arith.addf %70, %72 : vector<1x192xf32>
    %74 = arith.addf %73, %68 : vector<1x192xf32>
    %75 = vector.extract_strided_slice %74 {offsets = [0, 0], sizes = [1, 128], strides = [1, 1]} : vector<1x192xf32> to vector<1x128xf32>
    %76 = arith.negf %75 : vector<1x128xf32>
    %77 = math.exp %76 : vector<1x128xf32>
    %cst_36 = arith.constant 1.000000e+00 : f32
    %78 = vector.broadcast %cst_36 : f32 to vector<1x128xf32>
    %79 = arith.addf %78, %77 : vector<1x128xf32>
    %80 = arith.divf %78, %79 : vector<1x128xf32>
    %81 = vector.extract_strided_slice %80 {offsets = [0, 0], sizes = [1, 32], strides = [1, 1]} : vector<1x128xf32> to vector<1x32xf32>
    %82 = vector.extract_strided_slice %80 {offsets = [0, 32], sizes = [1, 32], strides = [1, 1]} : vector<1x128xf32> to vector<1x32xf32>
    %83 = vector.extract_strided_slice %80 {offsets = [0, 64], sizes = [1, 32], strides = [1, 1]} : vector<1x128xf32> to vector<1x32xf32>
    %84 = vector.extract_strided_slice %80 {offsets = [0, 96], sizes = [1, 32], strides = [1, 1]} : vector<1x128xf32> to vector<1x32xf32>
    %85 = vector.extract_strided_slice %74 {offsets = [0, 128], sizes = [1, 32], strides = [1, 1]} : vector<1x192xf32> to vector<1x32xf32>
    %86 = math.tanh %85 : vector<1x32xf32>
    %87 = vector.extract_strided_slice %74 {offsets = [0, 160], sizes = [1, 32], strides = [1, 1]} : vector<1x192xf32> to vector<1x32xf32>
    %88 = arith.mulf %81, %86 : vector<1x32xf32>
    %89 = arith.mulf %82, %33 : vector<1x32xf32>
    %90 = arith.addf %88, %89 : vector<1x32xf32>
    %91 = math.tanh %90 : vector<1x32xf32>
    %92 = arith.mulf %83, %91 : vector<1x32xf32>
    %93 = arith.mulf %84, %92 : vector<1x32xf32>
    %cst_37 = arith.constant 1.000000e+00 : f32
    %94 = vector.broadcast %cst_37 : f32 to vector<1x32xf32>
    %95 = arith.subf %94, %84 : vector<1x32xf32>
    %96 = arith.mulf %95, %87 : vector<1x32xf32>
    %97 = arith.addf %93, %96 : vector<1x32xf32>
    %c0_38 = arith.constant 0 : index
    %c0_39 = arith.constant 0 : index
    %98 = vector.load %arg5[%c0_38, %c0_39] : memref<32x128xf32, #tpu.memory_space<vmem>>, vector<32x128xf32>
    %cst_40 = arith.constant dense<0.000000e+00> : vector<1x128xf32>
    %99 = tpu.matmul %97, %98, %cst_40 {dimension_numbers = #tpu.dot_dimension_numbers<[1], [0], [0], [1], [0, 0, 1, 1], [], []>} : vector<1x32xf32>, vector<32x128xf32>, vector<1x128xf32> -> vector<1x128xf32>
    %c0_41 = arith.constant 0 : index
    %c0_42 = arith.constant 0 : index
    %100 = vector.load %arg6[%c0_41, %c0_42] : memref<1x128xf32, #tpu.memory_space<vmem>>, vector<1x128xf32>
    %101 = arith.addf %99, %100 : vector<1x128xf32>
    %102 = arith.index_cast %c1_i32_31 : i32 to index
    %c0_43 = arith.constant 0 : index
    %103 = vector.load %arg8[%102, %c0_43] : memref<8x128xf32, #tpu.memory_space<vmem>>, vector<1x128xf32>
    tpu.vector_store %arg8[%102, %c0_43], %101 {strides = array<i32>} : memref<8x128xf32, #tpu.memory_space<vmem>>, vector<1x128xf32>,
    %c1_i32_44 = arith.constant 1 : i32
    %104 = vector.broadcast %c1_i32_44 : i32 to vector<1x128xi32>
    %105 = arith.cmpi sge, %7, %104 : vector<1x128xi32>
    %cst_45 = arith.constant 0xFF800000 : f32
    %106 = vector.broadcast %cst_45 : f32 to vector<1x128xf32>
    %107 = arith.select %105, %101, %106 : vector<1x128xi1>, vector<1x128xf32>
    %cst_46 = arith.constant dense<0xFF800000> : vector<1xf32>
    %108 = vector.multi_reduction <maximumf>, %107, %cst_46 [1] : vector<1x128xf32> to vector<1xf32>
    %109 = vector.shape_cast %108 : vector<1xf32> to vector<1x1xf32>
    %110 = vector.broadcast %109 : vector<1x1xf32> to vector<1x128xf32>
    %111 = arith.cmpf oeq, %107, %110 : vector<1x128xf32>
    %c128_i32_47 = arith.constant 128 : i32
    %112 = vector.broadcast %c128_i32_47 : i32 to vector<1x128xi32>
    %113 = arith.select %111, %7, %112 : vector<1x128xi1>, vector<1x128xi32>
    %cst_48 = arith.constant dense<2147483647> : vector<1xi32>
    %114 = vector.multi_reduction <minsi>, %113, %cst_48 [1] : vector<1x128xi32> to vector<1xi32>
    %115 = vector.shape_cast %114 : vector<1xi32> to vector<1x1xi32>
    %116 = arith.index_cast %c1_i32_31 : i32 to index
    %c0_49 = arith.constant 0 : index
    %117 = vector.load %arg9[%116, %c0_49] : memref<8x1xi32, #tpu.memory_space<vmem>>, vector<1x1xi32>
    tpu.vector_store %arg9[%116, %c0_49], %115 {strides = array<i32>} : memref<8x1xi32, #tpu.memory_space<vmem>>, vector<1x1xi32>,
    %c1_i32_50 = arith.constant 1 : i32
    %118 = vector.broadcast %c1_i32_50 : i32 to vector<1x1xi32>
    %119 = arith.addi %115, %118 : vector<1x1xi32>
    %120 = vector.broadcast %119 : vector<1x1xi32> to vector<1x16xi32>
    %121 = arith.cmpi eq, %8, %120 : vector<1x16xi32>
    %122 = arith.extui %121 : vector<1x16xi1> to vector<1x16xi32>
    %123 = arith.sitofp %122 : vector<1x16xi32> to vector<1x16xf32>
    %c0_51 = arith.constant 0 : index
    %c0_52 = arith.constant 0 : index
    %124 = vector.load %arg7[%c0_51, %c0_52] : memref<16x192xf32, #tpu.memory_space<vmem>>, vector<16x192xf32>
    %cst_53 = arith.constant dense<0.000000e+00> : vector<1x192xf32>
    %125 = tpu.matmul %123, %124, %cst_53 {dimension_numbers = #tpu.dot_dimension_numbers<[1], [0], [0], [1], [0, 0, 1, 1], [], []>} : vector<1x16xf32>, vector<16x192xf32>, vector<1x192xf32> -> vector<1x192xf32>
    %c2_i32 = arith.constant 2 : i32
    %126 = arith.index_cast %c2_i32 : i32 to index
    %c0_54 = arith.constant 0 : index
    %127 = vector.load %arg10[%126, %c0_54] : memref<8x192xf32, #tpu.memory_space<vmem>>, vector<1x192xf32>
    %c0_55 = arith.constant 0 : index
    %c0_56 = arith.constant 0 : index
    %128 = vector.load %arg3[%c0_55, %c0_56] : memref<32x192xf32, #tpu.memory_space<vmem>>, vector<32x192xf32>
    %cst_57 = arith.constant dense<0.000000e+00> : vector<1x192xf32>
    %129 = tpu.matmul %97, %128, %cst_57 {dimension_numbers = #tpu.dot_dimension_numbers<[1], [0], [0], [1], [0, 0, 1, 1], [], []>} : vector<1x32xf32>, vector<32x192xf32>, vector<1x192xf32> -> vector<1x192xf32>
    %130 = arith.addf %127, %129 : vector<1x192xf32>
    %131 = arith.addf %130, %125 : vector<1x192xf32>
    %132 = vector.extract_strided_slice %131 {offsets = [0, 0], sizes = [1, 128], strides = [1, 1]} : vector<1x192xf32> to vector<1x128xf32>
    %133 = arith.negf %132 : vector<1x128xf32>
    %134 = math.exp %133 : vector<1x128xf32>
    %cst_58 = arith.constant 1.000000e+00 : f32
    %135 = vector.broadcast %cst_58 : f32 to vector<1x128xf32>
    %136 = arith.addf %135, %134 : vector<1x128xf32>
    %137 = arith.divf %135, %136 : vector<1x128xf32>
    %138 = vector.extract_strided_slice %137 {offsets = [0, 0], sizes = [1, 32], strides = [1, 1]} : vector<1x128xf32> to vector<1x32xf32>
    %139 = vector.extract_strided_slice %137 {offsets = [0, 32], sizes = [1, 32], strides = [1, 1]} : vector<1x128xf32> to vector<1x32xf32>
    %140 = vector.extract_strided_slice %137 {offsets = [0, 64], sizes = [1, 32], strides = [1, 1]} : vector<1x128xf32> to vector<1x32xf32>
    %141 = vector.extract_strided_slice %137 {offsets = [0, 96], sizes = [1, 32], strides = [1, 1]} : vector<1x128xf32> to vector<1x32xf32>
    %142 = vector.extract_strided_slice %131 {offsets = [0, 128], sizes = [1, 32], strides = [1, 1]} : vector<1x192xf32> to vector<1x32xf32>
    %143 = math.tanh %142 : vector<1x32xf32>
    %144 = vector.extract_strided_slice %131 {offsets = [0, 160], sizes = [1, 32], strides = [1, 1]} : vector<1x192xf32> to vector<1x32xf32>
    %145 = arith.mulf %138, %143 : vector<1x32xf32>
    %146 = arith.mulf %139, %90 : vector<1x32xf32>
    %147 = arith.addf %145, %146 : vector<1x32xf32>
    %148 = math.tanh %147 : vector<1x32xf32>
    %149 = arith.mulf %140, %148 : vector<1x32xf32>
    %150 = arith.mulf %141, %149 : vector<1x32xf32>
    %cst_59 = arith.constant 1.000000e+00 : f32
    %151 = vector.broadcast %cst_59 : f32 to vector<1x32xf32>
    %152 = arith.subf %151, %141 : vector<1x32xf32>
    %153 = arith.mulf %152, %144 : vector<1x32xf32>
    %154 = arith.addf %150, %153 : vector<1x32xf32>
    %c0_60 = arith.constant 0 : index
    %c0_61 = arith.constant 0 : index
    %155 = vector.load %arg5[%c0_60, %c0_61] : memref<32x128xf32, #tpu.memory_space<vmem>>, vector<32x128xf32>
    %cst_62 = arith.constant dense<0.000000e+00> : vector<1x128xf32>
    %156 = tpu.matmul %154, %155, %cst_62 {dimension_numbers = #tpu.dot_dimension_numbers<[1], [0], [0], [1], [0, 0, 1, 1], [], []>} : vector<1x32xf32>, vector<32x128xf32>, vector<1x128xf32> -> vector<1x128xf32>
    %c0_63 = arith.constant 0 : index
    %c0_64 = arith.constant 0 : index
    %157 = vector.load %arg6[%c0_63, %c0_64] : memref<1x128xf32, #tpu.memory_space<vmem>>, vector<1x128xf32>
    %158 = arith.addf %156, %157 : vector<1x128xf32>
    %159 = arith.index_cast %c2_i32 : i32 to index
    %c0_65 = arith.constant 0 : index
    %160 = vector.load %arg8[%159, %c0_65] : memref<8x128xf32, #tpu.memory_space<vmem>>, vector<1x128xf32>
    tpu.vector_store %arg8[%159, %c0_65], %158 {strides = array<i32>} : memref<8x128xf32, #tpu.memory_space<vmem>>, vector<1x128xf32>,
    %c1_i32_66 = arith.constant 1 : i32
    %161 = vector.broadcast %c1_i32_66 : i32 to vector<1x128xi32>
    %162 = arith.cmpi sge, %7, %161 : vector<1x128xi32>
    %cst_67 = arith.constant 0xFF800000 : f32
    %163 = vector.broadcast %cst_67 : f32 to vector<1x128xf32>
    %164 = arith.select %162, %158, %163 : vector<1x128xi1>, vector<1x128xf32>
    %cst_68 = arith.constant dense<0xFF800000> : vector<1xf32>
    %165 = vector.multi_reduction <maximumf>, %164, %cst_68 [1] : vector<1x128xf32> to vector<1xf32>
    %166 = vector.shape_cast %165 : vector<1xf32> to vector<1x1xf32>
    %167 = vector.broadcast %166 : vector<1x1xf32> to vector<1x128xf32>
    %168 = arith.cmpf oeq, %164, %167 : vector<1x128xf32>
    %c128_i32_69 = arith.constant 128 : i32
    %169 = vector.broadcast %c128_i32_69 : i32 to vector<1x128xi32>
    %170 = arith.select %168, %7, %169 : vector<1x128xi1>, vector<1x128xi32>
    %cst_70 = arith.constant dense<2147483647> : vector<1xi32>
    %171 = vector.multi_reduction <minsi>, %170, %cst_70 [1] : vector<1x128xi32> to vector<1xi32>
    %172 = vector.shape_cast %171 : vector<1xi32> to vector<1x1xi32>
    %173 = arith.index_cast %c2_i32 : i32 to index
    %c0_71 = arith.constant 0 : index
    %174 = vector.load %arg9[%173, %c0_71] : memref<8x1xi32, #tpu.memory_space<vmem>>, vector<1x1xi32>
    tpu.vector_store %arg9[%173, %c0_71], %172 {strides = array<i32>} : memref<8x1xi32, #tpu.memory_space<vmem>>, vector<1x1xi32>,
    %c1_i32_72 = arith.constant 1 : i32
    %175 = vector.broadcast %c1_i32_72 : i32 to vector<1x1xi32>
    %176 = arith.addi %172, %175 : vector<1x1xi32>
    %177 = vector.broadcast %176 : vector<1x1xi32> to vector<1x16xi32>
    %178 = arith.cmpi eq, %8, %177 : vector<1x16xi32>
    %179 = arith.extui %178 : vector<1x16xi1> to vector<1x16xi32>
    %180 = arith.sitofp %179 : vector<1x16xi32> to vector<1x16xf32>
    %c0_73 = arith.constant 0 : index
    %c0_74 = arith.constant 0 : index
    %181 = vector.load %arg7[%c0_73, %c0_74] : memref<16x192xf32, #tpu.memory_space<vmem>>, vector<16x192xf32>
    %cst_75 = arith.constant dense<0.000000e+00> : vector<1x192xf32>
    %182 = tpu.matmul %180, %181, %cst_75 {dimension_numbers = #tpu.dot_dimension_numbers<[1], [0], [0], [1], [0, 0, 1, 1], [], []>} : vector<1x16xf32>, vector<16x192xf32>, vector<1x192xf32> -> vector<1x192xf32>
    %c3_i32 = arith.constant 3 : i32
    %183 = arith.index_cast %c3_i32 : i32 to index
    %c0_76 = arith.constant 0 : index
    %184 = vector.load %arg10[%183, %c0_76] : memref<8x192xf32, #tpu.memory_space<vmem>>, vector<1x192xf32>
    %c0_77 = arith.constant 0 : index
    %c0_78 = arith.constant 0 : index
    %185 = vector.load %arg3[%c0_77, %c0_78] : memref<32x192xf32, #tpu.memory_space<vmem>>, vector<32x192xf32>
    %cst_79 = arith.constant dense<0.000000e+00> : vector<1x192xf32>
    %186 = tpu.matmul %154, %185, %cst_79 {dimension_numbers = #tpu.dot_dimension_numbers<[1], [0], [0], [1], [0, 0, 1, 1], [], []>} : vector<1x32xf32>, vector<32x192xf32>, vector<1x192xf32> -> vector<1x192xf32>
    %187 = arith.addf %184, %186 : vector<1x192xf32>
    %188 = arith.addf %187, %182 : vector<1x192xf32>
    %189 = vector.extract_strided_slice %188 {offsets = [0, 0], sizes = [1, 128], strides = [1, 1]} : vector<1x192xf32> to vector<1x128xf32>
    %190 = arith.negf %189 : vector<1x128xf32>
    %191 = math.exp %190 : vector<1x128xf32>
    %cst_80 = arith.constant 1.000000e+00 : f32
    %192 = vector.broadcast %cst_80 : f32 to vector<1x128xf32>
    %193 = arith.addf %192, %191 : vector<1x128xf32>
    %194 = arith.divf %192, %193 : vector<1x128xf32>
    %195 = vector.extract_strided_slice %194 {offsets = [0, 0], sizes = [1, 32], strides = [1, 1]} : vector<1x128xf32> to vector<1x32xf32>
    %196 = vector.extract_strided_slice %194 {offsets = [0, 32], sizes = [1, 32], strides = [1, 1]} : vector<1x128xf32> to vector<1x32xf32>
    %197 = vector.extract_strided_slice %194 {offsets = [0, 64], sizes = [1, 32], strides = [1, 1]} : vector<1x128xf32> to vector<1x32xf32>
    %198 = vector.extract_strided_slice %194 {offsets = [0, 96], sizes = [1, 32], strides = [1, 1]} : vector<1x128xf32> to vector<1x32xf32>
    %199 = vector.extract_strided_slice %188 {offsets = [0, 128], sizes = [1, 32], strides = [1, 1]} : vector<1x192xf32> to vector<1x32xf32>
    %200 = math.tanh %199 : vector<1x32xf32>
    %201 = vector.extract_strided_slice %188 {offsets = [0, 160], sizes = [1, 32], strides = [1, 1]} : vector<1x192xf32> to vector<1x32xf32>
    %202 = arith.mulf %195, %200 : vector<1x32xf32>
    %203 = arith.mulf %196, %147 : vector<1x32xf32>
    %204 = arith.addf %202, %203 : vector<1x32xf32>
    %205 = math.tanh %204 : vector<1x32xf32>
    %206 = arith.mulf %197, %205 : vector<1x32xf32>
    %207 = arith.mulf %198, %206 : vector<1x32xf32>
    %cst_81 = arith.constant 1.000000e+00 : f32
    %208 = vector.broadcast %cst_81 : f32 to vector<1x32xf32>
    %209 = arith.subf %208, %198 : vector<1x32xf32>
    %210 = arith.mulf %209, %201 : vector<1x32xf32>
    %211 = arith.addf %207, %210 : vector<1x32xf32>
    %c0_82 = arith.constant 0 : index
    %c0_83 = arith.constant 0 : index
    %212 = vector.load %arg5[%c0_82, %c0_83] : memref<32x128xf32, #tpu.memory_space<vmem>>, vector<32x128xf32>
    %cst_84 = arith.constant dense<0.000000e+00> : vector<1x128xf32>
    %213 = tpu.matmul %211, %212, %cst_84 {dimension_numbers = #tpu.dot_dimension_numbers<[1], [0], [0], [1], [0, 0, 1, 1], [], []>} : vector<1x32xf32>, vector<32x128xf32>, vector<1x128xf32> -> vector<1x128xf32>
    %c0_85 = arith.constant 0 : index
    %c0_86 = arith.constant 0 : index
    %214 = vector.load %arg6[%c0_85, %c0_86] : memref<1x128xf32, #tpu.memory_space<vmem>>, vector<1x128xf32>
    %215 = arith.addf %213, %214 : vector<1x128xf32>
    %216 = arith.index_cast %c3_i32 : i32 to index
    %c0_87 = arith.constant 0 : index
    %217 = vector.load %arg8[%216, %c0_87] : memref<8x128xf32, #tpu.memory_space<vmem>>, vector<1x128xf32>
    tpu.vector_store %arg8[%216, %c0_87], %215 {strides = array<i32>} : memref<8x128xf32, #tpu.memory_space<vmem>>, vector<1x128xf32>,
    %c1_i32_88 = arith.constant 1 : i32
    %218 = vector.broadcast %c1_i32_88 : i32 to vector<1x128xi32>
    %219 = arith.cmpi sge, %7, %218 : vector<1x128xi32>
    %cst_89 = arith.constant 0xFF800000 : f32
    %220 = vector.broadcast %cst_89 : f32 to vector<1x128xf32>
    %221 = arith.select %219, %215, %220 : vector<1x128xi1>, vector<1x128xf32>
    %cst_90 = arith.constant dense<0xFF800000> : vector<1xf32>
    %222 = vector.multi_reduction <maximumf>, %221, %cst_90 [1] : vector<1x128xf32> to vector<1xf32>
    %223 = vector.shape_cast %222 : vector<1xf32> to vector<1x1xf32>
    %224 = vector.broadcast %223 : vector<1x1xf32> to vector<1x128xf32>
    %225 = arith.cmpf oeq, %221, %224 : vector<1x128xf32>
    %c128_i32_91 = arith.constant 128 : i32
    %226 = vector.broadcast %c128_i32_91 : i32 to vector<1x128xi32>
    %227 = arith.select %225, %7, %226 : vector<1x128xi1>, vector<1x128xi32>
    %cst_92 = arith.constant dense<2147483647> : vector<1xi32>
    %228 = vector.multi_reduction <minsi>, %227, %cst_92 [1] : vector<1x128xi32> to vector<1xi32>
    %229 = vector.shape_cast %228 : vector<1xi32> to vector<1x1xi32>
    %230 = arith.index_cast %c3_i32 : i32 to index
    %c0_93 = arith.constant 0 : index
    %231 = vector.load %arg9[%230, %c0_93] : memref<8x1xi32, #tpu.memory_space<vmem>>, vector<1x1xi32>
    tpu.vector_store %arg9[%230, %c0_93], %229 {strides = array<i32>} : memref<8x1xi32, #tpu.memory_space<vmem>>, vector<1x1xi32>,
    %c1_i32_94 = arith.constant 1 : i32
    %232 = vector.broadcast %c1_i32_94 : i32 to vector<1x1xi32>
    %233 = arith.addi %229, %232 : vector<1x1xi32>
    %234 = vector.broadcast %233 : vector<1x1xi32> to vector<1x16xi32>
    %235 = arith.cmpi eq, %8, %234 : vector<1x16xi32>
    %236 = arith.extui %235 : vector<1x16xi1> to vector<1x16xi32>
    %237 = arith.sitofp %236 : vector<1x16xi32> to vector<1x16xf32>
    %c0_95 = arith.constant 0 : index
    %c0_96 = arith.constant 0 : index
    %238 = vector.load %arg7[%c0_95, %c0_96] : memref<16x192xf32, #tpu.memory_space<vmem>>, vector<16x192xf32>
    %cst_97 = arith.constant dense<0.000000e+00> : vector<1x192xf32>
    %239 = tpu.matmul %237, %238, %cst_97 {dimension_numbers = #tpu.dot_dimension_numbers<[1], [0], [0], [1], [0, 0, 1, 1], [], []>} : vector<1x16xf32>, vector<16x192xf32>, vector<1x192xf32> -> vector<1x192xf32>
    %c4_i32 = arith.constant 4 : i32
    %240 = arith.index_cast %c4_i32 : i32 to index
    %c0_98 = arith.constant 0 : index
    %241 = vector.load %arg10[%240, %c0_98] : memref<8x192xf32, #tpu.memory_space<vmem>>, vector<1x192xf32>
    %c0_99 = arith.constant 0 : index
    %c0_100 = arith.constant 0 : index
    %242 = vector.load %arg3[%c0_99, %c0_100] : memref<32x192xf32, #tpu.memory_space<vmem>>, vector<32x192xf32>
    %cst_101 = arith.constant dense<0.000000e+00> : vector<1x192xf32>
    %243 = tpu.matmul %211, %242, %cst_101 {dimension_numbers = #tpu.dot_dimension_numbers<[1], [0], [0], [1], [0, 0, 1, 1], [], []>} : vector<1x32xf32>, vector<32x192xf32>, vector<1x192xf32> -> vector<1x192xf32>
    %244 = arith.addf %241, %243 : vector<1x192xf32>
    %245 = arith.addf %244, %239 : vector<1x192xf32>
    %246 = vector.extract_strided_slice %245 {offsets = [0, 0], sizes = [1, 128], strides = [1, 1]} : vector<1x192xf32> to vector<1x128xf32>
    %247 = arith.negf %246 : vector<1x128xf32>
    %248 = math.exp %247 : vector<1x128xf32>
    %cst_102 = arith.constant 1.000000e+00 : f32
    %249 = vector.broadcast %cst_102 : f32 to vector<1x128xf32>
    %250 = arith.addf %249, %248 : vector<1x128xf32>
    %251 = arith.divf %249, %250 : vector<1x128xf32>
    %252 = vector.extract_strided_slice %251 {offsets = [0, 0], sizes = [1, 32], strides = [1, 1]} : vector<1x128xf32> to vector<1x32xf32>
    %253 = vector.extract_strided_slice %251 {offsets = [0, 32], sizes = [1, 32], strides = [1, 1]} : vector<1x128xf32> to vector<1x32xf32>
    %254 = vector.extract_strided_slice %251 {offsets = [0, 64], sizes = [1, 32], strides = [1, 1]} : vector<1x128xf32> to vector<1x32xf32>
    %255 = vector.extract_strided_slice %251 {offsets = [0, 96], sizes = [1, 32], strides = [1, 1]} : vector<1x128xf32> to vector<1x32xf32>
    %256 = vector.extract_strided_slice %245 {offsets = [0, 128], sizes = [1, 32], strides = [1, 1]} : vector<1x192xf32> to vector<1x32xf32>
    %257 = math.tanh %256 : vector<1x32xf32>
    %258 = vector.extract_strided_slice %245 {offsets = [0, 160], sizes = [1, 32], strides = [1, 1]} : vector<1x192xf32> to vector<1x32xf32>
    %259 = arith.mulf %252, %257 : vector<1x32xf32>
    %260 = arith.mulf %253, %204 : vector<1x32xf32>
    %261 = arith.addf %259, %260 : vector<1x32xf32>
    %262 = math.tanh %261 : vector<1x32xf32>
    %263 = arith.mulf %254, %262 : vector<1x32xf32>
    %264 = arith.mulf %255, %263 : vector<1x32xf32>
    %cst_103 = arith.constant 1.000000e+00 : f32
    %265 = vector.broadcast %cst_103 : f32 to vector<1x32xf32>
    %266 = arith.subf %265, %255 : vector<1x32xf32>
    %267 = arith.mulf %266, %258 : vector<1x32xf32>
    %268 = arith.addf %264, %267 : vector<1x32xf32>
    %c0_104 = arith.constant 0 : index
    %c0_105 = arith.constant 0 : index
    %269 = vector.load %arg5[%c0_104, %c0_105] : memref<32x128xf32, #tpu.memory_space<vmem>>, vector<32x128xf32>
    %cst_106 = arith.constant dense<0.000000e+00> : vector<1x128xf32>
    %270 = tpu.matmul %268, %269, %cst_106 {dimension_numbers = #tpu.dot_dimension_numbers<[1], [0], [0], [1], [0, 0, 1, 1], [], []>} : vector<1x32xf32>, vector<32x128xf32>, vector<1x128xf32> -> vector<1x128xf32>
    %c0_107 = arith.constant 0 : index
    %c0_108 = arith.constant 0 : index
    %271 = vector.load %arg6[%c0_107, %c0_108] : memref<1x128xf32, #tpu.memory_space<vmem>>, vector<1x128xf32>
    %272 = arith.addf %270, %271 : vector<1x128xf32>
    %273 = arith.index_cast %c4_i32 : i32 to index
    %c0_109 = arith.constant 0 : index
    %274 = vector.load %arg8[%273, %c0_109] : memref<8x128xf32, #tpu.memory_space<vmem>>, vector<1x128xf32>
    tpu.vector_store %arg8[%273, %c0_109], %272 {strides = array<i32>} : memref<8x128xf32, #tpu.memory_space<vmem>>, vector<1x128xf32>,
    %c1_i32_110 = arith.constant 1 : i32
    %275 = vector.broadcast %c1_i32_110 : i32 to vector<1x128xi32>
    %276 = arith.cmpi sge, %7, %275 : vector<1x128xi32>
    %cst_111 = arith.constant 0xFF800000 : f32
    %277 = vector.broadcast %cst_111 : f32 to vector<1x128xf32>
    %278 = arith.select %276, %272, %277 : vector<1x128xi1>, vector<1x128xf32>
    %cst_112 = arith.constant dense<0xFF800000> : vector<1xf32>
    %279 = vector.multi_reduction <maximumf>, %278, %cst_112 [1] : vector<1x128xf32> to vector<1xf32>
    %280 = vector.shape_cast %279 : vector<1xf32> to vector<1x1xf32>
    %281 = vector.broadcast %280 : vector<1x1xf32> to vector<1x128xf32>
    %282 = arith.cmpf oeq, %278, %281 : vector<1x128xf32>
    %c128_i32_113 = arith.constant 128 : i32
    %283 = vector.broadcast %c128_i32_113 : i32 to vector<1x128xi32>
    %284 = arith.select %282, %7, %283 : vector<1x128xi1>, vector<1x128xi32>
    %cst_114 = arith.constant dense<2147483647> : vector<1xi32>
    %285 = vector.multi_reduction <minsi>, %284, %cst_114 [1] : vector<1x128xi32> to vector<1xi32>
    %286 = vector.shape_cast %285 : vector<1xi32> to vector<1x1xi32>
    %287 = arith.index_cast %c4_i32 : i32 to index
    %c0_115 = arith.constant 0 : index
    %288 = vector.load %arg9[%287, %c0_115] : memref<8x1xi32, #tpu.memory_space<vmem>>, vector<1x1xi32>
    tpu.vector_store %arg9[%287, %c0_115], %286 {strides = array<i32>} : memref<8x1xi32, #tpu.memory_space<vmem>>, vector<1x1xi32>,
    %c1_i32_116 = arith.constant 1 : i32
    %289 = vector.broadcast %c1_i32_116 : i32 to vector<1x1xi32>
    %290 = arith.addi %286, %289 : vector<1x1xi32>
    %291 = vector.broadcast %290 : vector<1x1xi32> to vector<1x16xi32>
    %292 = arith.cmpi eq, %8, %291 : vector<1x16xi32>
    %293 = arith.extui %292 : vector<1x16xi1> to vector<1x16xi32>
    %294 = arith.sitofp %293 : vector<1x16xi32> to vector<1x16xf32>
    %c0_117 = arith.constant 0 : index
    %c0_118 = arith.constant 0 : index
    %295 = vector.load %arg7[%c0_117, %c0_118] : memref<16x192xf32, #tpu.memory_space<vmem>>, vector<16x192xf32>
    %cst_119 = arith.constant dense<0.000000e+00> : vector<1x192xf32>
    %296 = tpu.matmul %294, %295, %cst_119 {dimension_numbers = #tpu.dot_dimension_numbers<[1], [0], [0], [1], [0, 0, 1, 1], [], []>} : vector<1x16xf32>, vector<16x192xf32>, vector<1x192xf32> -> vector<1x192xf32>
    %c5_i32 = arith.constant 5 : i32
    %297 = arith.index_cast %c5_i32 : i32 to index
    %c0_120 = arith.constant 0 : index
    %298 = vector.load %arg10[%297, %c0_120] : memref<8x192xf32, #tpu.memory_space<vmem>>, vector<1x192xf32>
    %c0_121 = arith.constant 0 : index
    %c0_122 = arith.constant 0 : index
    %299 = vector.load %arg3[%c0_121, %c0_122] : memref<32x192xf32, #tpu.memory_space<vmem>>, vector<32x192xf32>
    %cst_123 = arith.constant dense<0.000000e+00> : vector<1x192xf32>
    %300 = tpu.matmul %268, %299, %cst_123 {dimension_numbers = #tpu.dot_dimension_numbers<[1], [0], [0], [1], [0, 0, 1, 1], [], []>} : vector<1x32xf32>, vector<32x192xf32>, vector<1x192xf32> -> vector<1x192xf32>
    %301 = arith.addf %298, %300 : vector<1x192xf32>
    %302 = arith.addf %301, %296 : vector<1x192xf32>
    %303 = vector.extract_strided_slice %302 {offsets = [0, 0], sizes = [1, 128], strides = [1, 1]} : vector<1x192xf32> to vector<1x128xf32>
    %304 = arith.negf %303 : vector<1x128xf32>
    %305 = math.exp %304 : vector<1x128xf32>
    %cst_124 = arith.constant 1.000000e+00 : f32
    %306 = vector.broadcast %cst_124 : f32 to vector<1x128xf32>
    %307 = arith.addf %306, %305 : vector<1x128xf32>
    %308 = arith.divf %306, %307 : vector<1x128xf32>
    %309 = vector.extract_strided_slice %308 {offsets = [0, 0], sizes = [1, 32], strides = [1, 1]} : vector<1x128xf32> to vector<1x32xf32>
    %310 = vector.extract_strided_slice %308 {offsets = [0, 32], sizes = [1, 32], strides = [1, 1]} : vector<1x128xf32> to vector<1x32xf32>
    %311 = vector.extract_strided_slice %308 {offsets = [0, 64], sizes = [1, 32], strides = [1, 1]} : vector<1x128xf32> to vector<1x32xf32>
    %312 = vector.extract_strided_slice %308 {offsets = [0, 96], sizes = [1, 32], strides = [1, 1]} : vector<1x128xf32> to vector<1x32xf32>
    %313 = vector.extract_strided_slice %302 {offsets = [0, 128], sizes = [1, 32], strides = [1, 1]} : vector<1x192xf32> to vector<1x32xf32>
    %314 = math.tanh %313 : vector<1x32xf32>
    %315 = vector.extract_strided_slice %302 {offsets = [0, 160], sizes = [1, 32], strides = [1, 1]} : vector<1x192xf32> to vector<1x32xf32>
    %316 = arith.mulf %309, %314 : vector<1x32xf32>
    %317 = arith.mulf %310, %261 : vector<1x32xf32>
    %318 = arith.addf %316, %317 : vector<1x32xf32>
    %319 = math.tanh %318 : vector<1x32xf32>
    %320 = arith.mulf %311, %319 : vector<1x32xf32>
    %321 = arith.mulf %312, %320 : vector<1x32xf32>
    %cst_125 = arith.constant 1.000000e+00 : f32
    %322 = vector.broadcast %cst_125 : f32 to vector<1x32xf32>
    %323 = arith.subf %322, %312 : vector<1x32xf32>
    %324 = arith.mulf %323, %315 : vector<1x32xf32>
    %325 = arith.addf %321, %324 : vector<1x32xf32>
    %c0_126 = arith.constant 0 : index
    %c0_127 = arith.constant 0 : index
    %326 = vector.load %arg5[%c0_126, %c0_127] : memref<32x128xf32, #tpu.memory_space<vmem>>, vector<32x128xf32>
    %cst_128 = arith.constant dense<0.000000e+00> : vector<1x128xf32>
    %327 = tpu.matmul %325, %326, %cst_128 {dimension_numbers = #tpu.dot_dimension_numbers<[1], [0], [0], [1], [0, 0, 1, 1], [], []>} : vector<1x32xf32>, vector<32x128xf32>, vector<1x128xf32> -> vector<1x128xf32>
    %c0_129 = arith.constant 0 : index
    %c0_130 = arith.constant 0 : index
    %328 = vector.load %arg6[%c0_129, %c0_130] : memref<1x128xf32, #tpu.memory_space<vmem>>, vector<1x128xf32>
    %329 = arith.addf %327, %328 : vector<1x128xf32>
    %330 = arith.index_cast %c5_i32 : i32 to index
    %c0_131 = arith.constant 0 : index
    %331 = vector.load %arg8[%330, %c0_131] : memref<8x128xf32, #tpu.memory_space<vmem>>, vector<1x128xf32>
    tpu.vector_store %arg8[%330, %c0_131], %329 {strides = array<i32>} : memref<8x128xf32, #tpu.memory_space<vmem>>, vector<1x128xf32>,
    %c1_i32_132 = arith.constant 1 : i32
    %332 = vector.broadcast %c1_i32_132 : i32 to vector<1x128xi32>
    %333 = arith.cmpi sge, %7, %332 : vector<1x128xi32>
    %cst_133 = arith.constant 0xFF800000 : f32
    %334 = vector.broadcast %cst_133 : f32 to vector<1x128xf32>
    %335 = arith.select %333, %329, %334 : vector<1x128xi1>, vector<1x128xf32>
    %cst_134 = arith.constant dense<0xFF800000> : vector<1xf32>
    %336 = vector.multi_reduction <maximumf>, %335, %cst_134 [1] : vector<1x128xf32> to vector<1xf32>
    %337 = vector.shape_cast %336 : vector<1xf32> to vector<1x1xf32>
    %338 = vector.broadcast %337 : vector<1x1xf32> to vector<1x128xf32>
    %339 = arith.cmpf oeq, %335, %338 : vector<1x128xf32>
    %c128_i32_135 = arith.constant 128 : i32
    %340 = vector.broadcast %c128_i32_135 : i32 to vector<1x128xi32>
    %341 = arith.select %339, %7, %340 : vector<1x128xi1>, vector<1x128xi32>
    %cst_136 = arith.constant dense<2147483647> : vector<1xi32>
    %342 = vector.multi_reduction <minsi>, %341, %cst_136 [1] : vector<1x128xi32> to vector<1xi32>
    %343 = vector.shape_cast %342 : vector<1xi32> to vector<1x1xi32>
    %344 = arith.index_cast %c5_i32 : i32 to index
    %c0_137 = arith.constant 0 : index
    %345 = vector.load %arg9[%344, %c0_137] : memref<8x1xi32, #tpu.memory_space<vmem>>, vector<1x1xi32>
    tpu.vector_store %arg9[%344, %c0_137], %343 {strides = array<i32>} : memref<8x1xi32, #tpu.memory_space<vmem>>, vector<1x1xi32>,
    %c1_i32_138 = arith.constant 1 : i32
    %346 = vector.broadcast %c1_i32_138 : i32 to vector<1x1xi32>
    %347 = arith.addi %343, %346 : vector<1x1xi32>
    %348 = vector.broadcast %347 : vector<1x1xi32> to vector<1x16xi32>
    %349 = arith.cmpi eq, %8, %348 : vector<1x16xi32>
    %350 = arith.extui %349 : vector<1x16xi1> to vector<1x16xi32>
    %351 = arith.sitofp %350 : vector<1x16xi32> to vector<1x16xf32>
    %c0_139 = arith.constant 0 : index
    %c0_140 = arith.constant 0 : index
    %352 = vector.load %arg7[%c0_139, %c0_140] : memref<16x192xf32, #tpu.memory_space<vmem>>, vector<16x192xf32>
    %cst_141 = arith.constant dense<0.000000e+00> : vector<1x192xf32>
    %353 = tpu.matmul %351, %352, %cst_141 {dimension_numbers = #tpu.dot_dimension_numbers<[1], [0], [0], [1], [0, 0, 1, 1], [], []>} : vector<1x16xf32>, vector<16x192xf32>, vector<1x192xf32> -> vector<1x192xf32>
    %c6_i32 = arith.constant 6 : i32
    %354 = arith.index_cast %c6_i32 : i32 to index
    %c0_142 = arith.constant 0 : index
    %355 = vector.load %arg10[%354, %c0_142] : memref<8x192xf32, #tpu.memory_space<vmem>>, vector<1x192xf32>
    %c0_143 = arith.constant 0 : index
    %c0_144 = arith.constant 0 : index
    %356 = vector.load %arg3[%c0_143, %c0_144] : memref<32x192xf32, #tpu.memory_space<vmem>>, vector<32x192xf32>
    %cst_145 = arith.constant dense<0.000000e+00> : vector<1x192xf32>
    %357 = tpu.matmul %325, %356, %cst_145 {dimension_numbers = #tpu.dot_dimension_numbers<[1], [0], [0], [1], [0, 0, 1, 1], [], []>} : vector<1x32xf32>, vector<32x192xf32>, vector<1x192xf32> -> vector<1x192xf32>
    %358 = arith.addf %355, %357 : vector<1x192xf32>
    %359 = arith.addf %358, %353 : vector<1x192xf32>
    %360 = vector.extract_strided_slice %359 {offsets = [0, 0], sizes = [1, 128], strides = [1, 1]} : vector<1x192xf32> to vector<1x128xf32>
    %361 = arith.negf %360 : vector<1x128xf32>
    %362 = math.exp %361 : vector<1x128xf32>
    %cst_146 = arith.constant 1.000000e+00 : f32
    %363 = vector.broadcast %cst_146 : f32 to vector<1x128xf32>
    %364 = arith.addf %363, %362 : vector<1x128xf32>
    %365 = arith.divf %363, %364 : vector<1x128xf32>
    %366 = vector.extract_strided_slice %365 {offsets = [0, 0], sizes = [1, 32], strides = [1, 1]} : vector<1x128xf32> to vector<1x32xf32>
    %367 = vector.extract_strided_slice %365 {offsets = [0, 32], sizes = [1, 32], strides = [1, 1]} : vector<1x128xf32> to vector<1x32xf32>
    %368 = vector.extract_strided_slice %365 {offsets = [0, 64], sizes = [1, 32], strides = [1, 1]} : vector<1x128xf32> to vector<1x32xf32>
    %369 = vector.extract_strided_slice %365 {offsets = [0, 96], sizes = [1, 32], strides = [1, 1]} : vector<1x128xf32> to vector<1x32xf32>
    %370 = vector.extract_strided_slice %359 {offsets = [0, 128], sizes = [1, 32], strides = [1, 1]} : vector<1x192xf32> to vector<1x32xf32>
    %371 = math.tanh %370 : vector<1x32xf32>
    %372 = vector.extract_strided_slice %359 {offsets = [0, 160], sizes = [1, 32], strides = [1, 1]} : vector<1x192xf32> to vector<1x32xf32>
    %373 = arith.mulf %366, %371 : vector<1x32xf32>
    %374 = arith.mulf %367, %318 : vector<1x32xf32>
    %375 = arith.addf %373, %374 : vector<1x32xf32>
    %376 = math.tanh %375 : vector<1x32xf32>
    %377 = arith.mulf %368, %376 : vector<1x32xf32>
    %378 = arith.mulf %369, %377 : vector<1x32xf32>
    %cst_147 = arith.constant 1.000000e+00 : f32
    %379 = vector.broadcast %cst_147 : f32 to vector<1x32xf32>
    %380 = arith.subf %379, %369 : vector<1x32xf32>
    %381 = arith.mulf %380, %372 : vector<1x32xf32>
    %382 = arith.addf %378, %381 : vector<1x32xf32>
    %c0_148 = arith.constant 0 : index
    %c0_149 = arith.constant 0 : index
    %383 = vector.load %arg5[%c0_148, %c0_149] : memref<32x128xf32, #tpu.memory_space<vmem>>, vector<32x128xf32>
    %cst_150 = arith.constant dense<0.000000e+00> : vector<1x128xf32>
    %384 = tpu.matmul %382, %383, %cst_150 {dimension_numbers = #tpu.dot_dimension_numbers<[1], [0], [0], [1], [0, 0, 1, 1], [], []>} : vector<1x32xf32>, vector<32x128xf32>, vector<1x128xf32> -> vector<1x128xf32>
    %c0_151 = arith.constant 0 : index
    %c0_152 = arith.constant 0 : index
    %385 = vector.load %arg6[%c0_151, %c0_152] : memref<1x128xf32, #tpu.memory_space<vmem>>, vector<1x128xf32>
    %386 = arith.addf %384, %385 : vector<1x128xf32>
    %387 = arith.index_cast %c6_i32 : i32 to index
    %c0_153 = arith.constant 0 : index
    %388 = vector.load %arg8[%387, %c0_153] : memref<8x128xf32, #tpu.memory_space<vmem>>, vector<1x128xf32>
    tpu.vector_store %arg8[%387, %c0_153], %386 {strides = array<i32>} : memref<8x128xf32, #tpu.memory_space<vmem>>, vector<1x128xf32>,
    %c1_i32_154 = arith.constant 1 : i32
    %389 = vector.broadcast %c1_i32_154 : i32 to vector<1x128xi32>
    %390 = arith.cmpi sge, %7, %389 : vector<1x128xi32>
    %cst_155 = arith.constant 0xFF800000 : f32
    %391 = vector.broadcast %cst_155 : f32 to vector<1x128xf32>
    %392 = arith.select %390, %386, %391 : vector<1x128xi1>, vector<1x128xf32>
    %cst_156 = arith.constant dense<0xFF800000> : vector<1xf32>
    %393 = vector.multi_reduction <maximumf>, %392, %cst_156 [1] : vector<1x128xf32> to vector<1xf32>
    %394 = vector.shape_cast %393 : vector<1xf32> to vector<1x1xf32>
    %395 = vector.broadcast %394 : vector<1x1xf32> to vector<1x128xf32>
    %396 = arith.cmpf oeq, %392, %395 : vector<1x128xf32>
    %c128_i32_157 = arith.constant 128 : i32
    %397 = vector.broadcast %c128_i32_157 : i32 to vector<1x128xi32>
    %398 = arith.select %396, %7, %397 : vector<1x128xi1>, vector<1x128xi32>
    %cst_158 = arith.constant dense<2147483647> : vector<1xi32>
    %399 = vector.multi_reduction <minsi>, %398, %cst_158 [1] : vector<1x128xi32> to vector<1xi32>
    %400 = vector.shape_cast %399 : vector<1xi32> to vector<1x1xi32>
    %401 = arith.index_cast %c6_i32 : i32 to index
    %c0_159 = arith.constant 0 : index
    %402 = vector.load %arg9[%401, %c0_159] : memref<8x1xi32, #tpu.memory_space<vmem>>, vector<1x1xi32>
    tpu.vector_store %arg9[%401, %c0_159], %400 {strides = array<i32>} : memref<8x1xi32, #tpu.memory_space<vmem>>, vector<1x1xi32>,
    %c1_i32_160 = arith.constant 1 : i32
    %403 = vector.broadcast %c1_i32_160 : i32 to vector<1x1xi32>
    %404 = arith.addi %400, %403 : vector<1x1xi32>
    %405 = vector.broadcast %404 : vector<1x1xi32> to vector<1x16xi32>
    %406 = arith.cmpi eq, %8, %405 : vector<1x16xi32>
    %407 = arith.extui %406 : vector<1x16xi1> to vector<1x16xi32>
    %408 = arith.sitofp %407 : vector<1x16xi32> to vector<1x16xf32>
    %c0_161 = arith.constant 0 : index
    %c0_162 = arith.constant 0 : index
    %409 = vector.load %arg7[%c0_161, %c0_162] : memref<16x192xf32, #tpu.memory_space<vmem>>, vector<16x192xf32>
    %cst_163 = arith.constant dense<0.000000e+00> : vector<1x192xf32>
    %410 = tpu.matmul %408, %409, %cst_163 {dimension_numbers = #tpu.dot_dimension_numbers<[1], [0], [0], [1], [0, 0, 1, 1], [], []>} : vector<1x16xf32>, vector<16x192xf32>, vector<1x192xf32> -> vector<1x192xf32>
    %c7_i32 = arith.constant 7 : i32
    %411 = arith.index_cast %c7_i32 : i32 to index
    %c0_164 = arith.constant 0 : index
    %412 = vector.load %arg10[%411, %c0_164] : memref<8x192xf32, #tpu.memory_space<vmem>>, vector<1x192xf32>
    %c0_165 = arith.constant 0 : index
    %c0_166 = arith.constant 0 : index
    %413 = vector.load %arg3[%c0_165, %c0_166] : memref<32x192xf32, #tpu.memory_space<vmem>>, vector<32x192xf32>
    %cst_167 = arith.constant dense<0.000000e+00> : vector<1x192xf32>
    %414 = tpu.matmul %382, %413, %cst_167 {dimension_numbers = #tpu.dot_dimension_numbers<[1], [0], [0], [1], [0, 0, 1, 1], [], []>} : vector<1x32xf32>, vector<32x192xf32>, vector<1x192xf32> -> vector<1x192xf32>
    %415 = arith.addf %412, %414 : vector<1x192xf32>
    %416 = arith.addf %415, %410 : vector<1x192xf32>
    %417 = vector.extract_strided_slice %416 {offsets = [0, 0], sizes = [1, 128], strides = [1, 1]} : vector<1x192xf32> to vector<1x128xf32>
    %418 = arith.negf %417 : vector<1x128xf32>
    %419 = math.exp %418 : vector<1x128xf32>
    %cst_168 = arith.constant 1.000000e+00 : f32
    %420 = vector.broadcast %cst_168 : f32 to vector<1x128xf32>
    %421 = arith.addf %420, %419 : vector<1x128xf32>
    %422 = arith.divf %420, %421 : vector<1x128xf32>
    %423 = vector.extract_strided_slice %422 {offsets = [0, 0], sizes = [1, 32], strides = [1, 1]} : vector<1x128xf32> to vector<1x32xf32>
    %424 = vector.extract_strided_slice %422 {offsets = [0, 32], sizes = [1, 32], strides = [1, 1]} : vector<1x128xf32> to vector<1x32xf32>
    %425 = vector.extract_strided_slice %422 {offsets = [0, 64], sizes = [1, 32], strides = [1, 1]} : vector<1x128xf32> to vector<1x32xf32>
    %426 = vector.extract_strided_slice %422 {offsets = [0, 96], sizes = [1, 32], strides = [1, 1]} : vector<1x128xf32> to vector<1x32xf32>
    %427 = vector.extract_strided_slice %416 {offsets = [0, 128], sizes = [1, 32], strides = [1, 1]} : vector<1x192xf32> to vector<1x32xf32>
    %428 = math.tanh %427 : vector<1x32xf32>
    %429 = vector.extract_strided_slice %416 {offsets = [0, 160], sizes = [1, 32], strides = [1, 1]} : vector<1x192xf32> to vector<1x32xf32>
    %430 = arith.mulf %423, %428 : vector<1x32xf32>
    %431 = arith.mulf %424, %375 : vector<1x32xf32>
    %432 = arith.addf %430, %431 : vector<1x32xf32>
    %433 = math.tanh %432 : vector<1x32xf32>
    %434 = arith.mulf %425, %433 : vector<1x32xf32>
    %435 = arith.mulf %426, %434 : vector<1x32xf32>
    %cst_169 = arith.constant 1.000000e+00 : f32
    %436 = vector.broadcast %cst_169 : f32 to vector<1x32xf32>
    %437 = arith.subf %436, %426 : vector<1x32xf32>
    %438 = arith.mulf %437, %429 : vector<1x32xf32>
    %439 = arith.addf %435, %438 : vector<1x32xf32>
    %c0_170 = arith.constant 0 : index
    %c0_171 = arith.constant 0 : index
    %440 = vector.load %arg5[%c0_170, %c0_171] : memref<32x128xf32, #tpu.memory_space<vmem>>, vector<32x128xf32>
    %cst_172 = arith.constant dense<0.000000e+00> : vector<1x128xf32>
    %441 = tpu.matmul %439, %440, %cst_172 {dimension_numbers = #tpu.dot_dimension_numbers<[1], [0], [0], [1], [0, 0, 1, 1], [], []>} : vector<1x32xf32>, vector<32x128xf32>, vector<1x128xf32> -> vector<1x128xf32>
    %c0_173 = arith.constant 0 : index
    %c0_174 = arith.constant 0 : index
    %442 = vector.load %arg6[%c0_173, %c0_174] : memref<1x128xf32, #tpu.memory_space<vmem>>, vector<1x128xf32>
    %443 = arith.addf %441, %442 : vector<1x128xf32>
    %444 = arith.index_cast %c7_i32 : i32 to index
    %c0_175 = arith.constant 0 : index
    %445 = vector.load %arg8[%444, %c0_175] : memref<8x128xf32, #tpu.memory_space<vmem>>, vector<1x128xf32>
    tpu.vector_store %arg8[%444, %c0_175], %443 {strides = array<i32>} : memref<8x128xf32, #tpu.memory_space<vmem>>, vector<1x128xf32>,
    %c1_i32_176 = arith.constant 1 : i32
    %446 = vector.broadcast %c1_i32_176 : i32 to vector<1x128xi32>
    %447 = arith.cmpi sge, %7, %446 : vector<1x128xi32>
    %cst_177 = arith.constant 0xFF800000 : f32
    %448 = vector.broadcast %cst_177 : f32 to vector<1x128xf32>
    %449 = arith.select %447, %443, %448 : vector<1x128xi1>, vector<1x128xf32>
    %cst_178 = arith.constant dense<0xFF800000> : vector<1xf32>
    %450 = vector.multi_reduction <maximumf>, %449, %cst_178 [1] : vector<1x128xf32> to vector<1xf32>
    %451 = vector.shape_cast %450 : vector<1xf32> to vector<1x1xf32>
    %452 = vector.broadcast %451 : vector<1x1xf32> to vector<1x128xf32>
    %453 = arith.cmpf oeq, %449, %452 : vector<1x128xf32>
    %c128_i32_179 = arith.constant 128 : i32
    %454 = vector.broadcast %c128_i32_179 : i32 to vector<1x128xi32>
    %455 = arith.select %453, %7, %454 : vector<1x128xi1>, vector<1x128xi32>
    %cst_180 = arith.constant dense<2147483647> : vector<1xi32>
    %456 = vector.multi_reduction <minsi>, %455, %cst_180 [1] : vector<1x128xi32> to vector<1xi32>
    %457 = vector.shape_cast %456 : vector<1xi32> to vector<1x1xi32>
    %458 = arith.index_cast %c7_i32 : i32 to index
    %c0_181 = arith.constant 0 : index
    %459 = vector.load %arg9[%458, %c0_181] : memref<8x1xi32, #tpu.memory_space<vmem>>, vector<1x1xi32>
    tpu.vector_store %arg9[%458, %c0_181], %457 {strides = array<i32>} : memref<8x1xi32, #tpu.memory_space<vmem>>, vector<1x1xi32>,
    %c1_i32_182 = arith.constant 1 : i32
    %460 = vector.broadcast %c1_i32_182 : i32 to vector<1x1xi32>
    %461 = arith.addi %457, %460 : vector<1x1xi32>
    %462 = vector.broadcast %461 : vector<1x1xi32> to vector<1x16xi32>
    %463 = arith.cmpi eq, %8, %462 : vector<1x16xi32>
    %464 = arith.extui %463 : vector<1x16xi1> to vector<1x16xi32>
    %465 = arith.sitofp %464 : vector<1x16xi32> to vector<1x16xf32>
    %c0_183 = arith.constant 0 : index
    %c0_184 = arith.constant 0 : index
    %466 = vector.load %arg7[%c0_183, %c0_184] : memref<16x192xf32, #tpu.memory_space<vmem>>, vector<16x192xf32>
    %cst_185 = arith.constant dense<0.000000e+00> : vector<1x192xf32>
    %467 = tpu.matmul %465, %466, %cst_185 {dimension_numbers = #tpu.dot_dimension_numbers<[1], [0], [0], [1], [0, 0, 1, 1], [], []>} : vector<1x16xf32>, vector<16x192xf32>, vector<1x192xf32> -> vector<1x192xf32>
    %c8_i32 = arith.constant 8 : i32
    return
  }
  func.func @transform_0(%arg0: i32) -> (i32, i32) {
    %c0_i32 = arith.constant 0 : i32
    %c0_i32_0 = arith.constant 0 : i32
    %c0_i32_1 = arith.constant 0 : i32
    return %c0_i32, %c0_i32_0 : i32, i32
  }
  func.func @transform_1(%arg0: i32) -> (i32, i32) {
    %c0_i32 = arith.constant 0 : i32
    %c0_i32_0 = arith.constant 0 : i32
    %c0_i32_1 = arith.constant 0 : i32
    return %c0_i32, %c0_i32_0 : i32, i32
  }
  func.func @transform_2(%arg0: i32) -> (i32, i32) {
    %c0_i32 = arith.constant 0 : i32
    %c0_i32_0 = arith.constant 0 : i32
    %c0_i32_1 = arith.constant 0 : i32
    return %c0_i32, %c0_i32_0 : i32, i32
  }
  func.func @transform_3(%arg0: i32) -> (i32, i32) {
    %c0_i32 = arith.constant 0 : i32
    %c0_i32_0 = arith.constant 0 : i32
    %c0_i32_1 = arith.constant 0 : i32
    return %c0_i32, %c0_i32_0 : i32, i32
  }
  func.func @transform_4(%arg0: i32) -> (i32, i32) {
    %c0_i32 = arith.constant 0 : i32
    %c0_i32_0 = arith.constant 0 : i32
    %c0_i32_1 = arith.constant 0 : i32
    return %c0_i32, %c0_i32_0 : i32, i32
  }
  func.func @transform_5(%arg0: i32) -> (i32, i32) {
    %c0_i32 = arith.constant 0 : i32
    %c0_i32_0 = arith.constant 0 : i32
    %c0_i32_1 = arith.constant 0 : i32
    return %c0_i32, %c0_i32_0 : i32, i32
  }
  func.func @transform_6(%arg0: i32) -> (i32, i32) {
    %c0_i32 = arith.constant 0 : i32
    %c0_i32_0 = arith.constant 0 : i32
    %c0_i32_1 = arith.constant 0 : i32
    return %c0_i32, %c0_i32_0 : i32, i32
  }
  func.func @transform_7(%arg0: i32) -> (i32, i32) {
    %c0_i32 = arith.constant 0 : i32
    %c0_i32_0 = arith.constant 0 : i32
    %c0_i32_1 = arith.constant 0 : i32
    return %c0_i32, %c0_i32_0 : i32, i32
  }
  func.func @transform_8(%arg0: i32) -> (i32, i32) {
    %c0_i32 = arith.constant 0 : i32
    %c0_i32_0 = arith.constant 0 : i32
    %c0_i32_1 = arith.constant 0 : i32
    return %c0_i32, %c0_i32_0 : i32, i32
  }
}

</mosaic_0001>

<bundles_post_ra>
// kernel: tpu_custom_call.1
= control target key start
LH: loop header
LB: loop body
LE: loop exit
PB: predicated region body
PF: predicated region fallthrough
CT: control target
= control target key end

     0   :  { %14 = vsyncpa [#allocation4], 0  ;;  %s3989_s0 = inlined_call_operand.hbm [shape: f32[8,28], index: 0, kind: input, shape index: {}]   ;;  %s3990_s1 = inlined_call_operand.hbm [shape: f32[28,192], index: 1, kind: input, shape index: {}]   ;;  %s3991_s2 = inlined_call_operand.hbm [shape: f32[32,192], index: 2, kind: input, shape index: {}]   ;;  %s3992_s3 = inlined_call_operand.vmem [shape: f32[1,192], index: 3, kind: input, shape index: {}]   ;;  %s3993_s4 = inlined_call_operand.hbm [shape: f32[32,128], index: 4, kind: input, shape index: {}]   ;;  %s3994_s5 = inlined_call_operand.vmem [shape: f32[1,128], index: 5, kind: input, shape index: {}]   ;;  %s3995_s6 = inlined_call_operand.hbm [shape: f32[16,192], index: 6, kind: input, shape index: {}]   ;;  %s3996_s7 = inlined_call_operand.hbm [shape: f32[8,128], index: 7, kind: output, shape index: {0}]   ;;  %s3997_s8 = inlined_call_operand.vmem [shape: s32[8,1], index: 8, kind: output, shape index: {1}]  }
   0x1   :  { %15 = vsyncpa [#allocation7], 0 }
   0x2   :  { %16 = vsyncpa [#allocation10], 0 }
   0x3   :  { %17 = vsyncpa [#allocation5], 0  ;;  %s3452_s27 = smov [#allocation6]   ;;  %s3312_s9 = scalar_lea.hbm %s3990_s1, 1024 }
   0x4   :  { %s33_s28 = sshll.u32 %s3452_s27, 4  ;;  %p3313_p0 = scmp.ne.s32.totalorder %s3990_s1, %s3312_s9  ;;  %s34_s28 = int_to_ptr.vmem [resolvable:$true] %s33_s28 }
   0x5   :  { %p3316_p1 = scmp.lt.u32.totalorder %s3312_s9, %s3990_s1 }
   0x7   :  { %p3318_p2 = pnand %p3316_p1, %p3313_p0 }
   0x9   :  { %3321 = shalt.err (!%p3318_p2)
}
   0xa   :  { %s3322_s14 = scalar_lea.vmem %s34_s28, 1024  ;;  %p3327_p4 = scmp.lt.s32.totalorder %s34_s28, %s34_s28 }
   0xb   :  { %p3323_p3 = scmp.ne.s32.totalorder %s34_s28, %s3322_s14  ;;  %p3328_p5 = scmp.lt.s32.totalorder %s3322_s14, %s3322_s14 }
   0xd   :  { %p3329_p6 = por %p3328_p5, %p3327_p4 }
   0xf   :  { %p3330_p7 = pnand %p3329_p6, %p3323_p3 }
  0x11   :  { %3333 = shalt.err (!%p3330_p7)
}
  0x12   :  { %s3453_s15 = smov 256   ;;  %s3454_s16 = smov 16  }
  0x13   :  { %39 = dma.hbm_to_vmem [thread:$0]  %s3990_s1, 1024, %s34_s28, [#allocation7], %s3453_s15, %s3453_s15, %s3454_s16  }
  0x14   :  { %s3455_s19 = smov [#allocation9]   ;;  %s3334_s23 = scalar_lea.hbm %s3993_s4, 512 }
  0x15   :  { %s59_s20 = sshll.u32 %s3455_s19, 4  ;;  %p3335_p8 = scmp.ne.s32.totalorder %s3993_s4, %s3334_s23  ;;  %s60_s20 = int_to_ptr.vmem [resolvable:$true] %s59_s20 }
  0x16   :  { %p3338_p9 = scmp.lt.u32.totalorder %s3334_s23, %s3993_s4 }
  0x18   :  { %p3340_p10 = pnand %p3338_p9, %p3335_p8 }
  0x1a   :  { %3343 = shalt.err (!%p3340_p10)
}
  0x1b   :  { %s3344_s29 = scalar_lea.vmem %s60_s20, 512  ;;  %p3349_p12 = scmp.lt.s32.totalorder %s60_s20, %s60_s20 }
  0x1c   :  { %p3345_p11 = scmp.ne.s32.totalorder %s60_s20, %s3344_s29  ;;  %p3350_p13 = scmp.lt.s32.totalorder %s3344_s29, %s3344_s29 }
  0x1e   :  { %p3351_p0 = por %p3350_p13, %p3349_p12 }
  0x20   :  { %p3352_p1 = pnand %p3351_p0, %p3345_p11 }
  0x22   :  { %3355 = shalt.err (!%p3352_p1)
}
  0x23   :  { %s3456_s1 = smov 128   ;;  %s3457_s28 = smov 8  }
  0x24   :  { %65 = dma.hbm_to_vmem [thread:$0]  %s3993_s4, 512, %s60_s20, [#allocation10], %s3456_s1, %s3456_s1, %s3457_s28  }
  0x25   :  { %s3458_s10 = smov [#allocation3]   ;;  %s3459_s12 = smov [#allocation8]  }
  0x26   :  { %s24_s11 = sshll.u32 %s3458_s10, 4  ;;  %s45_s13 = sshll.u32 %s3459_s12, 4  ;;  %s25_s11 = int_to_ptr.vmem [resolvable:$true] %s24_s11  ;;  %s3542_s13 = int_to_ptr.vmem [resolvable:$true] %s45_s13 }
  0x27   :  { %s3356_s18 = scalar_lea.hbm %s3989_s0, 128 }
  0x28   :  { %p3357_p2 = scmp.ne.s32.totalorder %s3989_s0, %s3356_s18  ;;  %p3360_p3 = scmp.lt.u32.totalorder %s3356_s18, %s3989_s0 }
  0x2a   :  { %p3362_p4 = pnand %p3360_p3, %p3357_p2 }
  0x2c   :  { %3365 = shalt.err (!%p3362_p4)
}
  0x2d   :  { %s3366_s4 = scalar_lea.vmem %s25_s11, 128  ;;  %p3371_p6 = scmp.lt.s32.totalorder %s25_s11, %s25_s11 }
  0x2e   :  { %p3367_p5 = scmp.ne.s32.totalorder %s25_s11, %s3366_s4  ;;  %p3372_p7 = scmp.lt.s32.totalorder %s3366_s4, %s3366_s4 }
  0x30   :  { %p3373_p8 = por %p3372_p7, %p3371_p6 }
  0x32   :  { %p3374_p9 = pnand %p3373_p8, %p3367_p5 }
  0x34   :  { %3377 = shalt.err (!%p3374_p9)
}
  0x35   :  { %27 = dma.hbm_to_vmem [thread:$0]  %s3989_s0, 128, %s25_s11, [#allocation4]  }
  0x36   :  { %s3378_s27 = scalar_lea.hbm %s3991_s2, 1024 }
  0x37   :  { %p3379_p10 = scmp.ne.s32.totalorder %s3991_s2, %s3378_s27  ;;  %p3382_p11 = scmp.lt.u32.totalorder %s3378_s27, %s3991_s2 }
  0x39   :  { %p3384_p12 = pnand %p3382_p11, %p3379_p10 }
  0x3b   :  { %3387 = shalt.err (!%p3384_p12)
}
  0x3c   :  { %s3388_s9 = scalar_lea.vmem %s3542_s13, 1024  ;;  %p3393_p0 = scmp.lt.s32.totalorder %s3542_s13, %s3542_s13 }
  0x3d   :  { %p3389_p13 = scmp.ne.s32.totalorder %s3542_s13, %s3388_s9  ;;  %p3394_p1 = scmp.lt.s32.totalorder %s3388_s9, %s3388_s9 }
  0x3f   :  { %p3395_p2 = por %p3394_p1, %p3393_p0 }
  0x41   :  { %p3396_p3 = pnand %p3395_p2, %p3389_p13 }
  0x43   :  { %3399 = shalt.err (!%p3396_p3)
}
  0x44   :  { %51 = dma.hbm_to_vmem [thread:$0]  %s3991_s2, 1024, %s3542_s13, [#allocation7], %s3453_s15, %s3453_s15, %s3454_s16  }
  0x45   :  { %s3460_s11 = smov [#allocation11]   ;;  %s3400_s18 = scalar_lea.hbm %s3995_s6, 512 }
  0x46   :  { %s73_s12 = sshll.u32 %s3460_s11, 4  ;;  %p3401_p4 = scmp.ne.s32.totalorder %s3995_s6, %s3400_s18  ;;  %s74_s12 = int_to_ptr.vmem [resolvable:$true] %s73_s12 }
  0x47   :  { %p3404_p5 = scmp.lt.u32.totalorder %s3400_s18, %s3995_s6 }
  0x49   :  { %p3406_p6 = pnand %p3404_p5, %p3401_p4 }
  0x4b   :  { %3409 = shalt.err (!%p3406_p6)
}
  0x4c   :  { %s3410_s4 = scalar_lea.vmem %s74_s12, 512  ;;  %p3415_p8 = scmp.lt.s32.totalorder %s74_s12, %s74_s12 }
  0x4d   :  { %p3411_p7 = scmp.ne.s32.totalorder %s74_s12, %s3410_s4  ;;  %p3416_p9 = scmp.lt.s32.totalorder %s3410_s4, %s3410_s4 }
  0x4f   :  { %p3417_p10 = por %p3416_p9, %p3415_p8 }
  0x51   :  { %p3418_p11 = pnand %p3417_p10, %p3411_p7 }
  0x53   :  { %3421 = shalt.err (!%p3418_p11)
}
  0x54   :  { %79 = dma.hbm_to_vmem [thread:$0]  %s3995_s6, 512, %s74_s12, [#allocation10], %s3453_s15, %s3453_s15, %s3454_s16  }
  0x55   :  { %3444 = dma.done.wait [#allocation4], 128  }
  0x56   :  { %3445 = vsyncadd [#allocation4], 4294967168 }
  0x57   :  { %3446 = dma.done.wait [#allocation7], 2048  }
  0x58   :  { %3447 = vsyncadd [#allocation7], 4294965248 }
  0x59   :  { %3448 = dma.done.wait [#allocation10], 1024  }
  0x5a   :  { %3449 = vsyncadd [#allocation10], 4294966272  ;;  %v3461_v0 = vmov 0.0   ;;  %vm120_vm0 = vcmask 1043456   ;;  %vm3462_vm1 = vmmov 1   ;;  %v97_v2 = vld [vmem:[#allocation6 + $0x8] sm:$0xff]  ;;  %v106_v27 = vlaneseq }
  0x5b   :  { %191 = vmatprep.mubr.f32.mxu0 %v3461_v0  ;;  %281 = vmatprep.mubr.f32.mxu1 %v3461_v0  ;;  %vm3593_vm2 = vmpackc.low %vm120_vm0, %vm3462_vm1  ;;  %v99_v3 = vld [vmem:[#allocation6 + $0x18] sm:$0xff]  ;;  %v96_v4 = vld [vmem:[#allocation6] sm:$0xff]  ;;  %vm116_vm3 = vcmask 228352   ;;  %v3463_v31 = vmov 1966171168   ;;  %vm199_vm4 = vcmask 523264  }
  0x5c   :  { %v3080_v5 = vpack.c.bf16 %v99_v3, %v97_v2  ;;  %v98_v6 = vld [vmem:[#allocation6 + $0x10] sm:$0xff]  ;;  %v206_v7 = vld [vmem:[#allocation8 + $0x8] sm:$0xff]  ;;  %v208_v8 = vld [vmem:[#allocation8 + $0x18] sm:$0xff]  ;;  %v107_v28 = vshrl.u32 %v106_v27, 7  ;;  %v292_v32 = vunpack.c.l.s4 %v3463_v31  ;;  %s3465_s16 = smov 96   ;;  %v3466_v2 = vmov 0.0|0.0  }
  0x5d   :  { %v3082_v9 = vpack.c.bf16 %v98_v6, %v96_v4  ;;  %v3597_v10 = vpack.c.bf16 %v208_v8, %v206_v7  ;;  %v101_v11 = vld [vmem:[#allocation6 + $0x28] sm:$0xff]  ;;  %v103_v12 = vld [vmem:[#allocation6 + $0x38] sm:$0xf]  ;;  %v205_v13 = vld [vmem:[#allocation8] sm:$0xff]  ;;  %vm3467_vm5 = vmmov 0   ;;  %s3468_s20 = smov 32  }
  0x5e   :  { %3081 = vmatprep.subr.bf16.mxu0 %v3080_v5  ;;  %v3084_v14 = vpack.c.bf16 %v103_v12, %v101_v11  ;;  %v207_v15 = vld [vmem:[#allocation8 + $0x10] sm:$0xff]  ;;  %v100_v16 = vld [vmem:[#allocation6 + $0x20] sm:$0xff]  ;;  %v210_v20 = vld [vmem:[#allocation8 + $0x28] sm:$0xff]  ;;  %v3616_v29 = vsub.s32 0, %v107_v28  ;;  %v112_v33 = vsub.s32 1, %v107_v28  ;;  %v293_v35 = vunpack.c.0.s8 %v292_v32 }
  0x5f   :  { %v102_v17 = vld [vmem:[#allocation6 + $0x30] sm:$0xf]  ;;  %3083 = vmatpush1.bf16.msra.mxu0 %v3082_v9  ;;  %3091 = vmatprep.subr.bf16.mxu1 %v3597_v10  ;;  %v3600_v18 = vpack.c.bf16 %v207_v15, %v205_v13  ;;  %v212_v21 = vld [vmem:[#allocation8 + $0x38] sm:$0xff]  ;;  %v209_v23 = vld [vmem:[#allocation8 + $0x20] sm:$0xff]  ;;  %vm213_vm6 = vcmask 261120   ;;  %vm431_vm8 = vcmask 1040384  }
  0x60   :  { %v3087_v19 = vpack.c.bf16 %v102_v17, %v100_v16  ;;  %3086 = vmatprep.subr.msk.bf16.mxu0 %vm3593_vm2, %v3084_v14  ;;  %v3604_v22 = vpack.c.bf16 %v212_v21, %v210_v20  ;;  %v211_v24 = vld [vmem:[#allocation8 + $0x30] sm:$0xff]  ;;  %v95_v26 = vld [vmem:[#allocation3] sm:$0xff]  ;;  %v104_v30 = vld [vmem:[%s3992_s3] sm:$0x3]  ;;  %v3622_v40 = vsub.s32 %v293_v35, %v107_v28  ;;  %s3464_s3 = smov 64   ;;  %v3653_v20 = vand.u32 127, %v106_v27 }
  0x61   :  { %3093 = vmatpush1.bf16.msra.mxu1 %v3600_v18  ;;  %v3607_v25 = vpack.c.bf16 %v211_v24, %v209_v23  ;;  %v109_v34 = vrot.slane %v104_v30, %v3616_v29  ;;  %v113_v36 = vrot.slane %v104_v30, %v112_v33  ;;  %v203_v47 = vld [vmem:[#allocation11] ss:$8 sm:$0x3]  ;;  %v346_v1 = vld [vmem:[#allocation9 + $0x10] sm:$0xff]  ;;  %v347_v4 = vld [vmem:[#allocation9 + $0x18] sm:$0xff]  ;;  %vm452_vm11 = vcmask 0  }
  0x62   :  { %3095 = vmatprep.subr.bf16.mxu1 %v3604_v22  ;;  %v344_v62 = vld [vmem:[#allocation9] sm:$0xff]  ;;  %v345_v63 = vld [vmem:[#allocation9 + $0x8] sm:$0xff]  ;;  %v3636_v5 = vpack.c.bf16 %v347_v4, %v346_v1  ;;  %vm429_vm7 = vcmp.ge.s32.totalorder %v3653_v20, 1  ;;  %vm462_vm12 = vcmask 130048  }
  0x63   :  { %3089 = vmatpush1.bf16.msk.msra.mxu0 %vm3593_vm2, %v3087_v19  ;;  %v3631_v3 = vpack.c.bf16 %v345_v63, %v344_v62  ;;  %v348_v21 = vld [vmem:[%s3994_s5] sm:$0x1] }
  0x64   :  { %3098 = vmatprep.subr.bf16.mxu0 %v3466_v2 }
  0x65   :  { %3097 = vmatpush1.bf16.msra.mxu1 %v3607_v25 }
  0x66   :  { %2914 = vmatmul.mubr.msk.f32.vlgmr.msra.gmra.mrb[0].mxu0 %vm116_vm3, %v95_v26 }
  0x67   :  { %3000 = vmatprep.mubr.msk.f32.mxu0 %vm3467_vm5, %v3461_v0  ;;  %3100 = vmatpush3.bf16.msra.mxu0 %v3631_v3 }
  0x68   :  { %282 = vmatmul.mubr.f32.vlgmr.msra.gmra.mrb[0].mxu1 %v3461_v0  ;;  %3101 = vmatprep.subr.bf16.mxu0 %v3466_v2 }
  0x69   :  { %530 = vmatprep.mubr.f32.mxu1 %v3461_v0 }
  0x6b   :  { %3103 = vmatpush3.bf16.msra.mxu0 %v3636_v5 }
  0x6c   :  { %3116 = vmatprep.subr.bf16.mxu0 %v3466_v2 }
 0x139   :  { %v193_v37 = vpop.f32.mrb[0].mxu0 }
 0x13a   :  { %v194_v38 = vadd.f32 %v193_v37, %v109_v34  ;;  %v195_v39 = vpop.f32.mrb[1].mxu0 }
 0x13b   :  { %v196_v41 = vadd.f32 %v195_v39, %v113_v36  ;;  %v283_v42 = vpop.f32.mrb[0].mxu1  ;;  %v459_v39 = vld [vmem:[#allocation11 + $0x8] sm:$0xff] }
 0x13c   :  { %198 = vst [vmem:[#allocation2] sm:$0xff] %v194_v38  ;;  %v285_v43 = vpop.f32.mrb[1].mxu1 }
 0x13d   :  { %200 = vst.msk [vmem:[#allocation2 + $0x8] sm:$0xff] %vm199_vm4, %v196_v41  ;;  %v290_v44 = vcombine.low %v283_v42, %v285_v43  ;;  %v461_v41 = vld [vmem:[#allocation11 + $0x18] sm:$0xff]  ;;  %v458_v43 = vld [vmem:[#allocation11] sm:$0xff] }
 0x13e   :  { %v3665_v42 = vpack.c.bf16 %v461_v41, %v459_v39 }
 0x13f   :  { %v297_v45 = vrot.slane %v290_v44, %v3622_v40  ;;  %v460_v44 = vld [vmem:[#allocation11 + $0x10] sm:$0xff] }
 0x140   :  { %3105 = vmatprep.subr.bf16.mxu1 %v3665_v42 }
 0x141   :  { %v304_v46 = vrot.slane %v297_v45, %v3622_v40  ;;  %v3667_v45 = vpack.c.bf16 %v460_v44, %v458_v43 }
 0x143   :  { %3107 = vmatpush1.bf16.msra.mxu1 %v3667_v45 }
 0x144   :  { %v204_v48 = vld [vmem:[#allocation2] ss:$8 sm:$0x3]  ;;  %3109 = vmatprep.subr.bf16.mxu1 %v3597_v10  ;;  %v538_v62 = vld [vmem:[#allocation2 + $0x1] ss:$8 sm:$0x3] }
 0x145   :  { %v306_v49 = vadd.f32 %v304_v46, %v204_v48 }
 0x147   :  { %v307_v50 = vadd.f32 %v306_v49, %v203_v47 }
 0x149   :  { %337 = vrot.lane.b32.xlu1 %v307_v50, %s3464_s3  ;;  %v2915_v51 = vmul.f32 -1.442695, %v307_v50  ;;  %v315_v56 = vrot.slane %v307_v50, 1 }
 0x14b   :  { %3248 = vpow2.f32 %v2915_v51 }
 0x155   :  { %v3249_v52 = vpop.eup %3248 }
 0x156   :  { %v311_v53 = vadd.f32 1.0, %v3249_v52 }
 0x158   :  { %3250 = vrcp.f32 %v311_v53 }
 0x159   :  { %3252 = vtanh.f32 %v315_v56 }
 0x162   :  { %v3251_v54 = vpop.eup %3250 }
 0x163   :  { %v319_v55 = vmul.f32 0.0, %v3251_v54  ;;  %v3253_v57 = vpop.eup %3252  ;;  %v336_v12 = vsub.f32 1.0, %v3251_v54 }
 0x164   :  { %v318_v58 = vmul.f32 %v3253_v57, %v3251_v54 }
 0x165   :  { %321 = vrot.lane.b32.xlu0 %v319_v55, %s3465_s16 }
 0x1bb   :  { %v338_v8 = vpop.permute.xlu1 %337 }
 0x1bc   :  { %v339_v9 = vrot.slane %v338_v8, 1 }
 0x1be   :  { %v340_v11 = vsel %vm199_vm4, %v338_v8, %v339_v9 }
 0x1bf   :  { %v342_v14 = vmul.f32 %v340_v11, %v336_v12 }
 0x1d7   :  { %v322_v59 = vpop.permute.xlu0 %321 }
 0x1d8   :  { %v324_v60 = vadd.f32 %v322_v59, %v318_v58 }
 0x1da   :  { %3254 = vtanh.f32 %v324_v60 }
 0x1e4   :  { %v3255_v61 = vpop.eup %3254 }
 0x1e5   :  { %327 = vrot.lane.b32.xlu0 %v3255_v61, %s3464_s3 }
 0x257   :  { %v328_v6 = vpop.permute.xlu0 %327 }
 0x258   :  { %v330_v7 = vmul.f32 %v3251_v54, %v328_v6 }
 0x25a   :  { %332 = vrot.lane.b32.xlu1 %v330_v7, %s3468_s20 }
 0x2cc   :  { %v333_v13 = vpop.permute.xlu1 %332 }
 0x2cd   :  { %v335_v15 = vmul.f32 %v3251_v54, %v333_v13 }
 0x2cf   :  { %v343_v16 = vadd.f32 %v342_v14, %v335_v15 }
 0x2d1   :  { %v353_v17 = vrot.slane %v343_v16, %v3616_v29 }
 0x2d3   :  { %354 = vrot.lane.b32.xlu0 %v353_v17, %s3468_s20 }
 0x345   :  { %v355_v19 = vpop.permute.xlu0 %354 }
 0x346   :  { %3001 = vmatmul.mubr.msk.f32.vlgmr.msra.gmra.mrb[2].mxu0 %vm213_vm6, %v355_v19 }
 0x347   :  { %3118 = vmatpush3.bf16.msra.mxu0 %v3631_v3  ;;  %3011 = vmatprep.mubr.msk.f32.mxu0 %vm3467_vm5, %v3461_v0 }
 0x348   :  { %3119 = vmatprep.subr.bf16.mxu0 %v3466_v2 }
 0x34b   :  { %3121 = vmatpush3.bf16.msra.mxu0 %v3636_v5 }
 0x34c   :  { %3127 = vmatprep.subr.bf16.mxu0 %v3597_v10 }
 0x419   :  { %v424_v23 = vpop.f32.mrb[2].mxu0 }
 0x41a   :  { %v425_v24 = vadd.f32 %v424_v23, %v348_v21  ;;  %v3002_v26 = vpop.f32.mrb[3].mxu0 }
 0x41c   :  { %428 = vst [vmem:[#allocation12] sm:$0x1] %v425_v24  ;;  %v430_v28 = vsel %vm429_vm7, %v425_v24, -inf }
 0x41d   :  { %v432_v30 = vsel %vm431_vm8, %v430_v28, -inf }
 0x41e   :  { %433 = vmax.xlane.f32.xlu1 %v432_v30 }
 0x42f   :  { %668 = vrot.lane.b32.xlu1 %v324_v60, %s3468_s20 }
 0x4ab   :  { %v434_v27 = vpop.xlane.xlu1 %433 }
 0x4ac   :  { %vm435_vm9 = vcmp.eq.f32.partialorder %v430_v28, %v434_v27 }
 0x4ad   :  { %v436_v31 = vsel %vm435_vm9, %v3653_v20, 128 }
 0x4ae   :  { %v437_v32 = vsel %vm431_vm8, %v436_v31, 2147483647 }
 0x4af   :  { %v439_v33 = vshra.s32 %v437_v32, 16  ;;  %v438_v35 = vand.u32 65535, %v437_v32  ;;  %v669_v11 = vpop.permute.xlu1 %668 }
 0x4b1   :  { %v441_v34 = vcvt.s32.f32 %v439_v33  ;;  %v440_v37 = vcvt.s32.f32 %v438_v35 }
 0x4b3   :  { %442 = vmin.xlane.f32.xlu0 %v441_v34 }
 0x540   :  { %v443_v36 = vpop.xlane.xlu0 %442 }
 0x541   :  { %vm444_vm10 = vcmp.eq.f32.partialorder %v441_v34, %v443_v36  ;;  %v449_v46 = vcvt.f32.s32 %v443_v36  ;;  %v700_v36 = vld [vmem:[%s3994_s5] sm:$0x1] }
 0x542   :  { %v445_v38 = vsel %vm444_vm10, %v440_v37, inf }
 0x543   :  { %446 = vmin.xlane.f32.xlu0 %v445_v38  ;;  %v450_v48 = vshll.u32 %v449_v46, 16 }
 0x5d0   :  { %v447_v47 = vpop.xlane.xlu0 %446 }
 0x5d1   :  { %v448_v49 = vcvt.f32.s32 %v447_v47 }
 0x5d3   :  { %v451_v50 = vadd.s32 %v450_v48, %v448_v49 }
 0x5d5   :  { %453 = vst.msk [vmem:[%s3997_s8] sm:$0x1] %vm452_vm11, %v451_v50  ;;  %v454_v51 = vadd.s32 1, %v451_v50 }
 0x5d7   :  { %vm455_vm13 = vcmp.eq.s32.totalorder %v3653_v20, %v454_v51 }
 0x5d8   :  { %v2917_v52 = vsel %vm455_vm13, 1.0, %v3461_v0 }
 0x5d9   :  { %2918 = vmatmul.mubr.msk.f32.vlgmr.msra.gmra.mrb[2].mxu1 %vm462_vm12, %v2917_v52 }
 0x5da   :  { %3111 = vmatpush1.bf16.msra.mxu1 %v3600_v18  ;;  %611 = vmatprep.mubr.f32.mxu1 %v3461_v0 }
 0x5db   :  { %3113 = vmatprep.subr.bf16.mxu1 %v3604_v22 }
 0x5de   :  { %3115 = vmatpush1.bf16.msra.mxu1 %v3607_v25 }
 0x5df   :  { %3123 = vmatprep.subr.bf16.mxu1 %v3665_v42 }
 0x5e1   :  { %2919 = vmatmul.mubr.msk.f32.vlgmr.msra.gmra.mrb[4].mxu1 %vm213_vm6, %v355_v19 }
 0x5e2   :  { %3125 = vmatpush1.bf16.msra.mxu1 %v3667_v45  ;;  %878 = vmatprep.mubr.f32.mxu1 %v3461_v0 }
 0x5e3   :  { %3134 = vmatprep.subr.bf16.mxu1 %v3466_v2 }
 0x6ac   :  { %v532_v53 = vpop.f32.mrb[2].mxu1 }
 0x6ad   :  { %v534_v54 = vpop.f32.mrb[3].mxu1 }
 0x6ae   :  { %v639_v55 = vcombine.low %v532_v53, %v534_v54 }
 0x6b0   :  { %v646_v59 = vrot.slane %v639_v55, %v3622_v40 }
 0x6b2   :  { %v653_v63 = vrot.slane %v646_v59, %v3622_v40 }
 0x6b4   :  { %v613_v56 = vpop.f32.mrb[4].mxu1 }
 0x6b5   :  { %v615_v57 = vpop.f32.mrb[5].mxu1 }
 0x6b6   :  { %v620_v58 = vcombine.low %v613_v56, %v615_v57 }
 0x6b8   :  { %v627_v60 = vrot.slane %v620_v58, %v3622_v40 }
 0x6ba   :  { %v634_v61 = vrot.slane %v627_v60, %v3622_v40 }
 0x6bc   :  { %v636_v1 = vadd.f32 %v634_v61, %v538_v62 }
 0x6be   :  { %v655_v4 = vadd.f32 %v653_v63, %v636_v1 }
 0x6c0   :  { %v2920_v6 = vmul.f32 -1.442695, %v655_v4  ;;  %v663_v13 = vrot.slane %v655_v4, 1 }
 0x6c2   :  { %3256 = vpow2.f32 %v2920_v6 }
 0x6cc   :  { %v3257_v7 = vpop.eup %3256 }
 0x6cd   :  { %v659_v8 = vadd.f32 1.0, %v3257_v7 }
 0x6cf   :  { %3258 = vrcp.f32 %v659_v8 }
 0x6d0   :  { %3260 = vtanh.f32 %v663_v13 }
 0x6d9   :  { %v3259_v9 = vpop.eup %3258 }
 0x6da   :  { %v671_v12 = vmul.f32 %v3259_v9, %v669_v11  ;;  %v3261_v14 = vpop.eup %3260  ;;  %v688_v30 = vsub.f32 1.0, %v3259_v9  ;;  %v886_v11 = vld [vmem:[#allocation2 + $0x2] ss:$8 sm:$0x3] }
 0x6db   :  { %v666_v15 = vmul.f32 %v3261_v14, %v3259_v9 }
 0x6dc   :  { %673 = vrot.lane.b32.xlu0 %v671_v12, %s3465_s16 }
 0x74e   :  { %v674_v16 = vpop.permute.xlu0 %673 }
 0x74f   :  { %v676_v17 = vadd.f32 %v674_v16, %v666_v15 }
 0x751   :  { %3262 = vtanh.f32 %v676_v17 }
 0x75b   :  { %v3263_v19 = vpop.eup %3262 }
 0x75c   :  { %679 = vrot.lane.b32.xlu1 %v3263_v19, %s3464_s3 }
 0x760   :  { %689 = vrot.lane.b32.xlu1 %v655_v4, %s3464_s3 }
 0x7ce   :  { %v680_v21 = vpop.permute.xlu1 %679 }
 0x7cf   :  { %v682_v23 = vmul.f32 %v3259_v9, %v680_v21 }
 0x7d1   :  { %684 = vrot.lane.b32.xlu0 %v682_v23, %s3468_s20 }
 0x7d2   :  { %v690_v24 = vpop.permute.xlu1 %689 }
 0x7d3   :  { %v691_v26 = vrot.slane %v690_v24, 1 }
 0x7d5   :  { %v692_v28 = vsel %vm199_vm4, %v690_v24, %v691_v26 }
 0x7d6   :  { %v694_v31 = vmul.f32 %v692_v28, %v688_v30 }
 0x843   :  { %v685_v27 = vpop.permute.xlu0 %684 }
 0x844   :  { %v687_v32 = vmul.f32 %v3259_v9, %v685_v27 }
 0x846   :  { %v695_v33 = vadd.f32 %v694_v31, %v687_v32 }
 0x848   :  { %v705_v34 = vrot.slane %v695_v33, %v3616_v29 }
 0x84a   :  { %706 = vrot.lane.b32.xlu1 %v705_v34, %s3468_s20 }
 0x8bc   :  { %v707_v35 = vpop.permute.xlu1 %706 }
 0x8bd   :  { %3012 = vmatmul.mubr.msk.f32.vlgmr.msra.gmra.mrb[4].mxu0 %vm213_vm6, %v707_v35 }
 0x8be   :  { %3129 = vmatpush1.bf16.msra.mxu0 %v3600_v18  ;;  %959 = vmatprep.mubr.f32.mxu0 %v3461_v0 }
 0x8bf   :  { %3131 = vmatprep.subr.bf16.mxu0 %v3604_v22 }
 0x8c2   :  { %3133 = vmatpush1.bf16.msra.mxu0 %v3607_v25 }
 0x8c3   :  { %3141 = vmatprep.subr.bf16.mxu0 %v3665_v42 }
 0x8c5   :  { %2924 = vmatmul.mubr.msk.f32.vlgmr.msra.gmra.mrb[6].mxu0 %vm213_vm6, %v707_v35 }
 0x8c6   :  { %3143 = vmatpush1.bf16.msra.mxu0 %v3667_v45  ;;  %1226 = vmatprep.mubr.f32.mxu0 %v3461_v0 }
 0x8c7   :  { %3152 = vmatprep.subr.bf16.mxu0 %v3466_v2 }
 0x990   :  { %v776_v37 = vpop.f32.mrb[4].mxu0 }
 0x991   :  { %v777_v38 = vadd.f32 %v776_v37, %v700_v36  ;;  %v3013_v39 = vpop.f32.mrb[5].mxu0 }
 0x993   :  { %780 = vst [vmem:[#allocation12 + $0x1] sm:$0x1] %v777_v38  ;;  %v781_v41 = vsel %vm429_vm7, %v777_v38, -inf }
 0x994   :  { %v782_v43 = vsel %vm431_vm8, %v781_v41, -inf }
 0x995   :  { %783 = vmax.xlane.f32.xlu0 %v782_v43 }
 0x998   :  { %v961_v44 = vpop.f32.mrb[6].mxu0 }
 0x999   :  { %v963_v46 = vpop.f32.mrb[7].mxu0 }
 0x99a   :  { %v968_v47 = vcombine.low %v961_v44, %v963_v46 }
 0x99c   :  { %v975_v1 = vrot.slane %v968_v47, %v3622_v40  ;;  %v1048_v47 = vld [vmem:[%s3994_s5] sm:$0x1] }
 0x99e   :  { %v982_v7 = vrot.slane %v975_v1, %v3622_v40 }
 0x9a0   :  { %v984_v13 = vadd.f32 %v982_v7, %v886_v11 }
 0xa22   :  { %v784_v48 = vpop.xlane.xlu0 %783 }
 0xa23   :  { %vm785_vm14 = vcmp.eq.f32.partialorder %v781_v41, %v784_v48 }
 0xa24   :  { %v786_v49 = vsel %vm785_vm14, %v3653_v20, 128 }
 0xa25   :  { %v787_v50 = vsel %vm431_vm8, %v786_v49, 2147483647 }
 0xa26   :  { %v789_v51 = vshra.s32 %v787_v50, 16  ;;  %v788_v53 = vand.u32 65535, %v787_v50 }
 0xa28   :  { %v791_v52 = vcvt.s32.f32 %v789_v51  ;;  %v790_v55 = vcvt.s32.f32 %v788_v53 }
 0xa2a   :  { %792 = vmin.xlane.f32.xlu1 %v791_v52 }
 0xab7   :  { %v793_v54 = vpop.xlane.xlu1 %792 }
 0xab8   :  { %vm794_vm15 = vcmp.eq.f32.partialorder %v791_v52, %v793_v54  ;;  %v799_v57 = vcvt.f32.s32 %v793_v54 }
 0xab9   :  { %v795_v56 = vsel %vm794_vm15, %v790_v55, inf }
 0xaba   :  { %796 = vmin.xlane.f32.xlu0 %v795_v56  ;;  %v800_v59 = vshll.u32 %v799_v57, 16 }
 0xad0   :  { %1016 = vrot.lane.b32.xlu0 %v676_v17, %s3468_s20 }
 0xb47   :  { %v797_v58 = vpop.xlane.xlu0 %796 }
 0xb48   :  { %v798_v60 = vcvt.f32.s32 %v797_v58 }
 0xb4a   :  { %v801_v61 = vadd.s32 %v800_v59, %v798_v60 }
 0xb4b   :  { %v1017_v21 = vpop.permute.xlu0 %1016 }
 0xb4c   :  { %802 = vst.msk [vmem:[%s3997_s8 + $0x1] sm:$0x1] %vm452_vm11, %v801_v61  ;;  %v803_v62 = vadd.s32 1, %v801_v61 }
 0xb4e   :  { %vm804_vm0 = vcmp.eq.s32.totalorder %v3653_v20, %v803_v62 }
 0xb4f   :  { %v2922_v63 = vsel %vm804_vm0, 1.0, %v3461_v0 }
 0xb50   :  { %2923 = vmatmul.mubr.msk.f32.vlgmr.msra.gmra.mrb[6].mxu1 %vm462_vm12, %v2922_v63 }
 0xb51   :  { %3136 = vmatpush3.bf16.msra.mxu1 %v3631_v3  ;;  %3022 = vmatprep.mubr.msk.f32.mxu1 %vm3467_vm5, %v3461_v0 }
 0xb52   :  { %3137 = vmatprep.subr.bf16.mxu1 %v3466_v2 }
 0xb55   :  { %3139 = vmatpush3.bf16.msra.mxu1 %v3636_v5 }
 0xb56   :  { %3145 = vmatprep.subr.bf16.mxu1 %v3597_v10 }
 0xc23   :  { %v880_v4 = vpop.f32.mrb[6].mxu1 }
 0xc24   :  { %v882_v6 = vpop.f32.mrb[7].mxu1 }
 0xc25   :  { %v987_v8 = vcombine.low %v880_v4, %v882_v6 }
 0xc27   :  { %v994_v9 = vrot.slane %v987_v8, %v3622_v40 }
 0xc29   :  { %v1001_v12 = vrot.slane %v994_v9, %v3622_v40 }
 0xc2b   :  { %v1003_v14 = vadd.f32 %v1001_v12, %v984_v13 }
 0xc2d   :  { %1037 = vrot.lane.b32.xlu0 %v1003_v14, %s3464_s3  ;;  %v2925_v15 = vmul.f32 -1.442695, %v1003_v14  ;;  %v1011_v24 = vrot.slane %v1003_v14, 1 }
 0xc2f   :  { %3264 = vpow2.f32 %v2925_v15 }
 0xc39   :  { %v3265_v16 = vpop.eup %3264 }
 0xc3a   :  { %v1007_v17 = vadd.f32 1.0, %v3265_v16 }
 0xc3c   :  { %3266 = vrcp.f32 %v1007_v17 }
 0xc3d   :  { %3268 = vtanh.f32 %v1011_v24 }
 0xc46   :  { %v3267_v19 = vpop.eup %3266 }
 0xc47   :  { %v1019_v23 = vmul.f32 %v3267_v19, %v1017_v21  ;;  %v3269_v26 = vpop.eup %3268  ;;  %v1036_v37 = vsub.f32 1.0, %v3267_v19  ;;  %v1234_v21 = vld [vmem:[#allocation2 + $0x3] ss:$8 sm:$0x3] }
 0xc48   :  { %v1014_v28 = vmul.f32 %v3269_v26, %v3267_v19 }
 0xc49   :  { %1021 = vrot.lane.b32.xlu1 %v1019_v23, %s3465_s16 }
 0xc9f   :  { %v1038_v34 = vpop.permute.xlu0 %1037 }
 0xca0   :  { %v1039_v35 = vrot.slane %v1038_v34, 1 }
 0xca2   :  { %v1040_v36 = vsel %vm199_vm4, %v1038_v34, %v1039_v35 }
 0xca3   :  { %v1042_v39 = vmul.f32 %v1040_v36, %v1036_v37 }
 0xcbb   :  { %v1022_v30 = vpop.permute.xlu1 %1021 }
 0xcbc   :  { %v1024_v27 = vadd.f32 %v1022_v30, %v1014_v28 }
 0xcbe   :  { %3270 = vtanh.f32 %v1024_v27 }
 0xcc8   :  { %v3271_v31 = vpop.eup %3270 }
 0xcc9   :  { %1027 = vrot.lane.b32.xlu1 %v3271_v31, %s3464_s3 }
 0xd3b   :  { %v1028_v32 = vpop.permute.xlu1 %1027 }
 0xd3c   :  { %v1030_v33 = vmul.f32 %v3267_v19, %v1028_v32 }
 0xd3e   :  { %1032 = vrot.lane.b32.xlu1 %v1030_v33, %s3468_s20 }
 0xdb0   :  { %v1033_v38 = vpop.permute.xlu1 %1032 }
 0xdb1   :  { %v1035_v41 = vmul.f32 %v3267_v19, %v1033_v38 }
 0xdb3   :  { %v1043_v43 = vadd.f32 %v1042_v39, %v1035_v41 }
 0xdb5   :  { %v1053_v44 = vrot.slane %v1043_v43, %v3616_v29 }
 0xdb7   :  { %1054 = vrot.lane.b32.xlu0 %v1053_v44, %s3468_s20 }
 0xe29   :  { %v1055_v46 = vpop.permute.xlu0 %1054 }
 0xe2a   :  { %3023 = vmatmul.mubr.msk.f32.vlgmr.msra.gmra.mrb[8].mxu1 %vm213_vm6, %v1055_v46 }
 0xe2b   :  { %3147 = vmatpush1.bf16.msra.mxu1 %v3600_v18  ;;  %1307 = vmatprep.mubr.f32.mxu1 %v3461_v0 }
 0xe2c   :  { %3149 = vmatprep.subr.bf16.mxu1 %v3604_v22 }
 0xe2f   :  { %3151 = vmatpush1.bf16.msra.mxu1 %v3607_v25 }
 0xe30   :  { %3159 = vmatprep.subr.bf16.mxu1 %v3665_v42 }
 0xe32   :  { %2929 = vmatmul.mubr.msk.f32.vlgmr.msra.gmra.mrb[10].mxu1 %vm213_vm6, %v1055_v46 }
 0xe33   :  { %3161 = vmatpush1.bf16.msra.mxu1 %v3667_v45  ;;  %1574 = vmatprep.mubr.f32.mxu1 %v3461_v0 }
 0xe34   :  { %3170 = vmatprep.subr.bf16.mxu1 %v3466_v2 }
 0xefd   :  { %v1124_v48 = vpop.f32.mrb[8].mxu1 }
 0xefe   :  { %v1125_v49 = vadd.f32 %v1124_v48, %v1048_v47  ;;  %v3024_v50 = vpop.f32.mrb[9].mxu1 }
 0xf00   :  { %1128 = vst [vmem:[#allocation12 + $0x2] sm:$0x1] %v1125_v49  ;;  %v1129_v51 = vsel %vm429_vm7, %v1125_v49, -inf }
 0xf01   :  { %v1130_v52 = vsel %vm431_vm8, %v1129_v51, -inf }
 0xf02   :  { %1131 = vmax.xlane.f32.xlu1 %v1130_v52 }
 0xf05   :  { %v1309_v53 = vpop.f32.mrb[10].mxu1 }
 0xf06   :  { %v1311_v54 = vpop.f32.mrb[11].mxu1 }
 0xf07   :  { %v1316_v55 = vcombine.low %v1309_v53, %v1311_v54 }
 0xf09   :  { %v1323_v13 = vrot.slane %v1316_v55, %v3622_v40 }
 0xf0b   :  { %v1330_v16 = vrot.slane %v1323_v13, %v3622_v40 }
 0xf0d   :  { %v1332_v23 = vadd.f32 %v1330_v16, %v1234_v21 }
 0xf13   :  { %1364 = vrot.lane.b32.xlu1 %v1024_v27, %s3468_s20 }
 0xf8f   :  { %v1132_v56 = vpop.xlane.xlu1 %1131 }
 0xf90   :  { %vm1133_vm1 = vcmp.eq.f32.partialorder %v1129_v51, %v1132_v56 }
 0xf91   :  { %v1134_v57 = vsel %vm1133_vm1, %v3653_v20, 128 }
 0xf92   :  { %v1135_v58 = vsel %vm431_vm8, %v1134_v57, 2147483647 }
 0xf93   :  { %v1137_v59 = vshra.s32 %v1135_v58, 16  ;;  %v1136_v61 = vand.u32 65535, %v1135_v58  ;;  %v1365_v31 = vpop.permute.xlu1 %1364 }
 0xf95   :  { %v1139_v60 = vcvt.s32.f32 %v1137_v59  ;;  %v1138_v63 = vcvt.s32.f32 %v1136_v61 }
 0xf97   :  { %1140 = vmin.xlane.f32.xlu0 %v1139_v60 }
0x1024   :  { %v1141_v62 = vpop.xlane.xlu0 %1140 }
0x1025   :  { %vm1142_vm2 = vcmp.eq.f32.partialorder %v1139_v60, %v1141_v62  ;;  %v1147_v4 = vcvt.f32.s32 %v1141_v62 }
0x1026   :  { %v1143_v1 = vsel %vm1142_vm2, %v1138_v63, inf }
0x1027   :  { %1144 = vmin.xlane.f32.xlu0 %v1143_v1  ;;  %v1148_v7 = vshll.u32 %v1147_v4, 16 }
0x10b4   :  { %v1145_v6 = vpop.xlane.xlu0 %1144 }
0x10b5   :  { %v1146_v8 = vcvt.f32.s32 %v1145_v6 }
0x10b7   :  { %v1149_v9 = vadd.s32 %v1148_v7, %v1146_v8 }
0x10b9   :  { %1150 = vst.msk [vmem:[%s3997_s8 + $0x2] sm:$0x1] %vm452_vm11, %v1149_v9  ;;  %v1151_v11 = vadd.s32 1, %v1149_v9 }
0x10bb   :  { %vm1152_vm3 = vcmp.eq.s32.totalorder %v3653_v20, %v1151_v11 }
0x10bc   :  { %v2927_v12 = vsel %vm1152_vm3, 1.0, %v3461_v0 }
0x10bd   :  { %2928 = vmatmul.mubr.msk.f32.vlgmr.msra.gmra.mrb[8].mxu0 %vm462_vm12, %v2927_v12 }
0x10be   :  { %3154 = vmatpush3.bf16.msra.mxu0 %v3631_v3  ;;  %3033 = vmatprep.mubr.msk.f32.mxu0 %vm3467_vm5, %v3461_v0 }
0x10bf   :  { %3155 = vmatprep.subr.bf16.mxu0 %v3466_v2 }
0x10c2   :  { %3157 = vmatpush3.bf16.msra.mxu0 %v3636_v5 }
0x10c3   :  { %3163 = vmatprep.subr.bf16.mxu0 %v3597_v10 }
0x1190   :  { %v1228_v14 = vpop.f32.mrb[8].mxu0 }
0x1191   :  { %v1230_v15 = vpop.f32.mrb[9].mxu0 }
0x1192   :  { %v1335_v17 = vcombine.low %v1228_v14, %v1230_v15 }
0x1194   :  { %v1342_v19 = vrot.slane %v1335_v17, %v3622_v40 }
0x1196   :  { %v1349_v24 = vrot.slane %v1342_v19, %v3622_v40 }
0x1198   :  { %v1351_v26 = vadd.f32 %v1349_v24, %v1332_v23  ;;  %v1582_v24 = vld [vmem:[#allocation2 + $0x4] ss:$8 sm:$0x3] }
0x119a   :  { %v2930_v28 = vmul.f32 -1.442695, %v1351_v26  ;;  %v1359_v33 = vrot.slane %v1351_v26, 1 }
0x119c   :  { %3272 = vpow2.f32 %v2930_v28 }
0x11a6   :  { %v3273_v30 = vpop.eup %3272 }
0x11a7   :  { %v1355_v27 = vadd.f32 1.0, %v3273_v30 }
0x11a9   :  { %3274 = vrcp.f32 %v1355_v27 }
0x11aa   :  { %3276 = vtanh.f32 %v1359_v33 }
0x11b3   :  { %v3275_v10 = vpop.eup %3274 }
0x11b4   :  { %v1367_v32 = vmul.f32 %v3275_v10, %v1365_v31  ;;  %v3277_v34 = vpop.eup %3276  ;;  %v1384_v47 = vsub.f32 1.0, %v3275_v10 }
0x11b5   :  { %v1362_v35 = vmul.f32 %v3277_v34, %v3275_v10 }
0x11b6   :  { %1369 = vrot.lane.b32.xlu0 %v1367_v32, %s3465_s16 }
0x1228   :  { %v1370_v36 = vpop.permute.xlu0 %1369 }
0x1229   :  { %v1372_v37 = vadd.f32 %v1370_v36, %v1362_v35 }
0x122b   :  { %3278 = vtanh.f32 %v1372_v37 }
0x1235   :  { %v3279_v38 = vpop.eup %3278 }
0x1236   :  { %1375 = vrot.lane.b32.xlu1 %v3279_v38, %s3464_s3 }
0x123a   :  { %1385 = vrot.lane.b32.xlu1 %v1351_v26, %s3464_s3 }
0x12a8   :  { %v1376_v39 = vpop.permute.xlu1 %1375 }
0x12a9   :  { %v1378_v41 = vmul.f32 %v3275_v10, %v1376_v39  ;;  %v1932_v39 = vld [vmem:[#allocation8 + $0x8] sm:$0xff] }
0x12ab   :  { %1380 = vrot.lane.b32.xlu0 %v1378_v41, %s3468_s20  ;;  %v1934_v41 = vld [vmem:[#allocation8 + $0x18] sm:$0xff] }
0x12ac   :  { %v1386_v43 = vpop.permute.xlu1 %1385 }
0x12ad   :  { %v1387_v44 = vrot.slane %v1386_v43, 1 }
0x12af   :  { %v1388_v46 = vsel %vm199_vm4, %v1386_v43, %v1387_v44  ;;  %v3823_v43 = vpack.c.bf16 %v1934_v41, %v1932_v39 }
0x12b0   :  { %v1390_v49 = vmul.f32 %v1388_v46, %v1384_v47 }
0x131d   :  { %v1381_v48 = vpop.permute.xlu0 %1380 }
0x131e   :  { %v1383_v50 = vmul.f32 %v3275_v10, %v1381_v48 }
0x1320   :  { %v1391_v51 = vadd.f32 %v1390_v49, %v1383_v50 }
0x1322   :  { %v1401_v52 = vrot.slane %v1391_v51, %v3616_v29 }
0x1324   :  { %1402 = vrot.lane.b32.xlu1 %v1401_v52, %s3468_s20 }
0x1396   :  { %v1403_v53 = vpop.permute.xlu1 %1402 }
0x1397   :  { %3034 = vmatmul.mubr.msk.f32.vlgmr.msra.gmra.mrb[10].mxu0 %vm213_vm6, %v1403_v53 }
0x1398   :  { %3165 = vmatpush1.bf16.msra.mxu0 %v3600_v18  ;;  %1655 = vmatprep.mubr.f32.mxu0 %v3461_v0  ;;  %v1396_v18 = vld [vmem:[%s3994_s5] sm:$0x1] }
0x1399   :  { %3167 = vmatprep.subr.bf16.mxu0 %v3604_v22 }
0x139c   :  { %3169 = vmatpush1.bf16.msra.mxu0 %v3607_v25 }
0x139d   :  { %3177 = vmatprep.subr.bf16.mxu0 %v3665_v42 }
0x139f   :  { %2934 = vmatmul.mubr.msk.f32.vlgmr.msra.gmra.mrb[12].mxu0 %vm213_vm6, %v1403_v53 }
0x13a0   :  { %3179 = vmatpush1.bf16.msra.mxu0 %v3667_v45  ;;  %1922 = vmatprep.mubr.f32.mxu0 %v3461_v0 }
0x13a1   :  { %3188 = vmatprep.subr.bf16.mxu0 %v3466_v2 }
0x146a   :  { %v1472_v54 = vpop.f32.mrb[10].mxu0 }
0x146b   :  { %v1473_v55 = vadd.f32 %v1472_v54, %v1396_v18  ;;  %v3035_v56 = vpop.f32.mrb[11].mxu0 }
0x146c   :  { %v1933_v56 = vld [vmem:[#allocation8 + $0x10] sm:$0xff] }
0x146d   :  { %1476 = vst [vmem:[#allocation12 + $0x3] sm:$0x1] %v1473_v55  ;;  %v1477_v22 = vsel %vm429_vm7, %v1473_v55, -inf  ;;  %v1931_v55 = vld [vmem:[#allocation8] sm:$0xff] }
0x146e   :  { %v1478_v25 = vsel %vm431_vm8, %v1477_v22, -inf }
0x146f   :  { %1479 = vmax.xlane.f32.xlu0 %v1478_v25  ;;  %v1938_v25 = vld [vmem:[#allocation8 + $0x38] sm:$0xff] }
0x1472   :  { %v1657_v42 = vpop.f32.mrb[12].mxu0 }
0x1473   :  { %v1659_v45 = vpop.f32.mrb[13].mxu0 }
0x1474   :  { %v1664_v57 = vcombine.low %v1657_v42, %v1659_v45  ;;  %v3830_v42 = vpack.c.bf16 %v1933_v56, %v1931_v55  ;;  %v2089_v55 = vld [vmem:[#allocation9 + $0x8] sm:$0xff]  ;;  %v2090_v56 = vld [vmem:[#allocation9 + $0x10] sm:$0xff] }
0x1476   :  { %v1671_v15 = vrot.slane %v1664_v57, %v3622_v40  ;;  %v1935_v57 = vld [vmem:[#allocation8 + $0x20] sm:$0xff] }
0x1478   :  { %v1678_v19 = vrot.slane %v1671_v15, %v3622_v40 }
0x14fc   :  { %v1480_v58 = vpop.xlane.xlu0 %1479 }
0x14fd   :  { %vm1481_vm9 = vcmp.eq.f32.partialorder %v1477_v22, %v1480_v58  ;;  %v1936_v22 = vld [vmem:[#allocation8 + $0x28] sm:$0xff]  ;;  %v1937_v58 = vld [vmem:[#allocation8 + $0x30] sm:$0xff] }
0x14fe   :  { %v1482_v59 = vsel %vm1481_vm9, %v3653_v20, 128  ;;  %v3832_v45 = vpack.c.bf16 %v1938_v25, %v1936_v22  ;;  %v2091_v25 = vld [vmem:[#allocation9 + $0x18] sm:$0xff] }
0x14ff   :  { %v1483_v60 = vsel %vm431_vm8, %v1482_v59, 2147483647 }
0x1500   :  { %v1485_v61 = vshra.s32 %v1483_v60, 16  ;;  %v1484_v63 = vand.u32 65535, %v1483_v60  ;;  %v3836_v60 = vpack.c.bf16 %v1937_v58, %v1935_v57  ;;  %v3874_v57 = vpack.c.bf16 %v2091_v25, %v2090_v56 }
0x1502   :  { %v1487_v62 = vcvt.s32.f32 %v1485_v61  ;;  %v1486_v4 = vcvt.s32.f32 %v1484_v63  ;;  %v1744_v61 = vld [vmem:[%s3994_s5] sm:$0x1] }
0x1504   :  { %1488 = vmin.xlane.f32.xlu1 %v1487_v62 }
0x1591   :  { %v1489_v1 = vpop.xlane.xlu1 %1488 }
0x1592   :  { %vm1490_vm10 = vcmp.eq.f32.partialorder %v1487_v62, %v1489_v1  ;;  %v1495_v7 = vcvt.f32.s32 %v1489_v1 }
0x1593   :  { %v1491_v6 = vsel %vm1490_vm10, %v1486_v4, inf }
0x1594   :  { %1492 = vmin.xlane.f32.xlu0 %v1491_v6  ;;  %v1496_v9 = vshll.u32 %v1495_v7, 16 }
0x15aa   :  { %1712 = vrot.lane.b32.xlu0 %v1372_v37, %s3468_s20 }
0x1621   :  { %v1493_v8 = vpop.xlane.xlu0 %1492 }
0x1622   :  { %v1494_v11 = vcvt.f32.s32 %v1493_v8 }
0x1624   :  { %v1497_v12 = vadd.s32 %v1496_v9, %v1494_v11 }
0x1625   :  { %v1713_v31 = vpop.permute.xlu0 %1712 }
0x1626   :  { %1498 = vst.msk [vmem:[%s3997_s8 + $0x3] sm:$0x1] %vm452_vm11, %v1497_v12  ;;  %v1499_v13 = vadd.s32 1, %v1497_v12 }
0x1628   :  { %vm1500_vm13 = vcmp.eq.s32.totalorder %v3653_v20, %v1499_v13 }
0x1629   :  { %v2932_v14 = vsel %vm1500_vm13, 1.0, %v3461_v0 }
0x162a   :  { %2933 = vmatmul.mubr.msk.f32.vlgmr.msra.gmra.mrb[12].mxu1 %vm462_vm12, %v2932_v14 }
0x162b   :  { %3172 = vmatpush3.bf16.msra.mxu1 %v3631_v3  ;;  %3044 = vmatprep.mubr.msk.f32.mxu1 %vm3467_vm5, %v3461_v0  ;;  %v1680_v3 = vadd.f32 %v1678_v19, %v1582_v24 }
0x162c   :  { %3173 = vmatprep.subr.bf16.mxu1 %v3466_v2 }
0x162f   :  { %3175 = vmatpush3.bf16.msra.mxu1 %v3636_v5 }
0x1630   :  { %3181 = vmatprep.subr.bf16.mxu1 %v3823_v43 }
0x16fd   :  { %v1576_v16 = vpop.f32.mrb[12].mxu1 }
0x16fe   :  { %v1578_v17 = vpop.f32.mrb[13].mxu1 }
0x16ff   :  { %v1683_v21 = vcombine.low %v1576_v16, %v1578_v17 }
0x1701   :  { %v1690_v23 = vrot.slane %v1683_v21, %v3622_v40 }
0x1703   :  { %v1697_v26 = vrot.slane %v1690_v23, %v3622_v40 }
0x1705   :  { %v1699_v28 = vadd.f32 %v1697_v26, %v1680_v3 }
0x1707   :  { %1733 = vrot.lane.b32.xlu0 %v1699_v28, %s3464_s3  ;;  %v2935_v30 = vmul.f32 -1.442695, %v1699_v28  ;;  %v1707_v33 = vrot.slane %v1699_v28, 1 }
0x1709   :  { %3280 = vpow2.f32 %v2935_v30 }
0x1713   :  { %v3281_v27 = vpop.eup %3280 }
0x1714   :  { %v1703_v5 = vadd.f32 1.0, %v3281_v27 }
0x1716   :  { %3282 = vrcp.f32 %v1703_v5 }
0x1717   :  { %3284 = vtanh.f32 %v1707_v33 }
0x1720   :  { %v3283_v10 = vpop.eup %3282 }
0x1721   :  { %v1715_v32 = vmul.f32 %v3283_v10, %v1713_v31  ;;  %v3285_v34 = vpop.eup %3284  ;;  %v1732_v50 = vsub.f32 1.0, %v3283_v10 }
0x1722   :  { %v1710_v35 = vmul.f32 %v3285_v34, %v3283_v10 }
0x1723   :  { %1717 = vrot.lane.b32.xlu1 %v1715_v32, %s3465_s16 }
0x1779   :  { %v1734_v47 = vpop.permute.xlu0 %1733 }
0x177a   :  { %v1735_v48 = vrot.slane %v1734_v47, 1 }
0x177c   :  { %v1736_v49 = vsel %vm199_vm4, %v1734_v47, %v1735_v48 }
0x177d   :  { %v1738_v52 = vmul.f32 %v1736_v49, %v1732_v50 }
0x1795   :  { %v1718_v36 = vpop.permute.xlu1 %1717 }
0x1796   :  { %v1720_v37 = vadd.f32 %v1718_v36, %v1710_v35  ;;  %v1930_v35 = vld [vmem:[#allocation2 + $0x5] ss:$8 sm:$0x3] }
0x1798   :  { %3286 = vtanh.f32 %v1720_v37 }
0x17a2   :  { %v3287_v38 = vpop.eup %3286 }
0x17a3   :  { %1723 = vrot.lane.b32.xlu1 %v3287_v38, %s3464_s3 }
0x1815   :  { %v1724_v44 = vpop.permute.xlu1 %1723 }
0x1816   :  { %v1726_v46 = vmul.f32 %v3283_v10, %v1724_v44 }
0x1818   :  { %1728 = vrot.lane.b32.xlu1 %v1726_v46, %s3468_s20 }
0x188a   :  { %v1729_v51 = vpop.permute.xlu1 %1728 }
0x188b   :  { %v1731_v53 = vmul.f32 %v3283_v10, %v1729_v51 }
0x188d   :  { %v1739_v18 = vadd.f32 %v1738_v52, %v1731_v53 }
0x188f   :  { %v1749_v54 = vrot.slane %v1739_v18, %v3616_v29 }
0x1891   :  { %1750 = vrot.lane.b32.xlu0 %v1749_v54, %s3468_s20  ;;  %v2088_v54 = vld [vmem:[#allocation9] sm:$0xff] }
0x1892   :  { %v3871_v22 = vpack.c.bf16 %v2089_v55, %v2088_v54  ;;  %v2278_v54 = vld [vmem:[#allocation2 + $0x6] ss:$8 sm:$0x3] }
0x1903   :  { %v1751_v59 = vpop.permute.xlu0 %1750 }
0x1904   :  { %3045 = vmatmul.mubr.msk.f32.vlgmr.msra.gmra.mrb[14].mxu1 %vm213_vm6, %v1751_v59 }
0x1905   :  { %3183 = vmatpush1.bf16.msra.mxu1 %v3830_v42  ;;  %2003 = vmatprep.mubr.f32.mxu1 %v3461_v0 }
0x1906   :  { %3185 = vmatprep.subr.bf16.mxu1 %v3832_v45 }
0x1909   :  { %3187 = vmatpush1.bf16.msra.mxu1 %v3836_v60 }
0x190c   :  { %2939 = vmatmul.mubr.msk.f32.vlgmr.msra.gmra.mrb[16].mxu1 %vm213_vm6, %v1751_v59 }
0x190d   :  { %2270 = vmatprep.mubr.f32.mxu1 %v3461_v0 }
0x19d7   :  { %v1820_v62 = vpop.f32.mrb[14].mxu1 }
0x19d8   :  { %v1821_v63 = vadd.f32 %v1820_v62, %v1744_v61  ;;  %v3046_v1 = vpop.f32.mrb[15].mxu1 }
0x19da   :  { %1824 = vst [vmem:[#allocation12 + $0x4] sm:$0x1] %v1821_v63  ;;  %v1825_v4 = vsel %vm429_vm7, %v1821_v63, -inf }
0x19db   :  { %v1826_v6 = vsel %vm431_vm8, %v1825_v4, -inf }
0x19dc   :  { %1827 = vmax.xlane.f32.xlu1 %v1826_v6 }
0x19df   :  { %v2005_v7 = vpop.f32.mrb[16].mxu1 }
0x19e0   :  { %v2007_v8 = vpop.f32.mrb[17].mxu1 }
0x19e1   :  { %v2012_v9 = vcombine.low %v2005_v7, %v2007_v8 }
0x19e3   :  { %v2019_v5 = vrot.slane %v2012_v9, %v3622_v40 }
0x19e5   :  { %v2026_v32 = vrot.slane %v2019_v5, %v3622_v40 }
0x19e7   :  { %v2028_v36 = vadd.f32 %v2026_v32, %v1930_v35  ;;  %v2200_v32 = vld [vmem:[#allocation11 + $0x8] sm:$0xff]  ;;  %v2199_v35 = vld [vmem:[#allocation11] sm:$0xff] }
0x19ed   :  { %2060 = vrot.lane.b32.xlu1 %v1720_v37, %s3468_s20 }
0x1a69   :  { %v1828_v11 = vpop.xlane.xlu1 %1827 }
0x1a6a   :  { %vm1829_vm14 = vcmp.eq.f32.partialorder %v1825_v4, %v1828_v11 }
0x1a6b   :  { %v1830_v12 = vsel %vm1829_vm14, %v3653_v20, 128 }
0x1a6c   :  { %v1831_v13 = vsel %vm431_vm8, %v1830_v12, 2147483647  ;;  %v2092_v12 = vld [vmem:[%s3994_s5] sm:$0x1] }
0x1a6d   :  { %v1833_v14 = vshra.s32 %v1831_v13, 16  ;;  %v1832_v16 = vand.u32 65535, %v1831_v13  ;;  %v2061_v47 = vpop.permute.xlu1 %2060 }
0x1a6f   :  { %v1835_v15 = vcvt.s32.f32 %v1833_v14  ;;  %v1834_v19 = vcvt.s32.f32 %v1832_v16 }
0x1a71   :  { %1836 = vmin.xlane.f32.xlu0 %v1835_v15 }
0x1afe   :  { %v1837_v17 = vpop.xlane.xlu0 %1836 }
0x1aff   :  { %vm1838_vm15 = vcmp.eq.f32.partialorder %v1835_v15, %v1837_v17  ;;  %v1843_v23 = vcvt.f32.s32 %v1837_v17 }
0x1b00   :  { %v1839_v21 = vsel %vm1838_vm15, %v1834_v19, inf }
0x1b01   :  { %1840 = vmin.xlane.f32.xlu0 %v1839_v21  ;;  %v1844_v26 = vshll.u32 %v1843_v23, 16 }
0x1b8e   :  { %v1841_v24 = vpop.xlane.xlu0 %1840 }
0x1b8f   :  { %v1842_v3 = vcvt.f32.s32 %v1841_v24 }
0x1b91   :  { %v1845_v28 = vadd.s32 %v1844_v26, %v1842_v3 }
0x1b93   :  { %1846 = vst.msk [vmem:[%s3997_s8 + $0x4] sm:$0x1] %vm452_vm11, %v1845_v28  ;;  %v1847_v30 = vadd.s32 1, %v1845_v28 }
0x1b95   :  { %vm1848_vm0 = vcmp.eq.s32.totalorder %v3653_v20, %v1847_v30 }
0x1b96   :  { %v2937_v27 = vsel %vm1848_vm0, 1.0, %v3461_v0 }
0x1b97   :  { %2938 = vmatmul.mubr.msk.f32.vlgmr.msra.gmra.mrb[14].mxu0 %vm462_vm12, %v2937_v27 }
0x1b98   :  { %3055 = vmatprep.mubr.msk.f32.mxu0 %vm3467_vm5, %v3461_v0  ;;  %3190 = vmatpush3.bf16.msra.mxu0 %v3871_v22 }
0x1b99   :  { %3191 = vmatprep.subr.bf16.mxu0 %v3466_v2 }
0x1b9c   :  { %3193 = vmatpush3.bf16.msra.mxu0 %v3874_v57 }
0x1b9d   :  { %3199 = vmatprep.subr.bf16.mxu0 %v3823_v43 }
0x1c6a   :  { %v1924_v10 = vpop.f32.mrb[14].mxu0 }
0x1c6b   :  { %v1926_v31 = vpop.f32.mrb[15].mxu0 }
0x1c6c   :  { %v2031_v33 = vcombine.low %v1924_v10, %v1926_v31 }
0x1c6e   :  { %v2038_v34 = vrot.slane %v2031_v33, %v3622_v40  ;;  %v2202_v33 = vld [vmem:[#allocation11 + $0x18] sm:$0xff] }
0x1c70   :  { %v2045_v37 = vrot.slane %v2038_v34, %v3622_v40  ;;  %v3194_v34 = vpack.c.bf16 %v2202_v33, %v2200_v32 }
0x1c72   :  { %v2047_v38 = vadd.f32 %v2045_v37, %v2028_v36  ;;  %v2201_v36 = vld [vmem:[#allocation11 + $0x10] sm:$0xff]  ;;  %3195 = vmatprep.subr.bf16.mxu1 %v3194_v34 }
0x1c73   :  { %v3196_v37 = vpack.c.bf16 %v2201_v36, %v2199_v35 }
0x1c74   :  { %v2940_v39 = vmul.f32 -1.442695, %v2047_v38  ;;  %v2055_v49 = vrot.slane %v2047_v38, 1 }
0x1c75   :  { %3197 = vmatpush1.bf16.msra.mxu1 %v3196_v37 }
0x1c76   :  { %3288 = vpow2.f32 %v2940_v39  ;;  %3206 = vmatprep.subr.bf16.mxu1 %v3466_v2 }
0x1c80   :  { %v3289_v41 = vpop.eup %3288 }
0x1c81   :  { %v2051_v44 = vadd.f32 1.0, %v3289_v41 }
0x1c83   :  { %3290 = vrcp.f32 %v2051_v44 }
0x1c84   :  { %3292 = vtanh.f32 %v2055_v49 }
0x1c8d   :  { %v3291_v46 = vpop.eup %3290 }
0x1c8e   :  { %v2063_v48 = vmul.f32 %v3291_v46, %v2061_v47  ;;  %v3293_v50 = vpop.eup %3292  ;;  %v2080_v1 = vsub.f32 1.0, %v3291_v46 }
0x1c8f   :  { %v2058_v51 = vmul.f32 %v3293_v50, %v3291_v46 }
0x1c90   :  { %2065 = vrot.lane.b32.xlu0 %v2063_v48, %s3465_s16 }
0x1d02   :  { %v2066_v52 = vpop.permute.xlu0 %2065 }
0x1d03   :  { %v3866_v53 = vadd.f32 %v2066_v52, %v2058_v51 }
0x1d05   :  { %3294 = vtanh.f32 %v3866_v53 }
0x1d0f   :  { %v3295_v18 = vpop.eup %3294 }
0x1d10   :  { %2071 = vrot.lane.b32.xlu1 %v3295_v18, %s3464_s3 }
0x1d14   :  { %2081 = vrot.lane.b32.xlu1 %v2047_v38, %s3464_s3 }
0x1d82   :  { %v2072_v58 = vpop.permute.xlu1 %2071 }
0x1d83   :  { %v2074_v59 = vmul.f32 %v3291_v46, %v2072_v58 }
0x1d85   :  { %2076 = vrot.lane.b32.xlu0 %v2074_v59, %s3468_s20 }
0x1d86   :  { %v2082_v61 = vpop.permute.xlu1 %2081 }
0x1d87   :  { %v2083_v62 = vrot.slane %v2082_v61, 1 }
0x1d89   :  { %v2084_v63 = vsel %vm199_vm4, %v2082_v61, %v2083_v62 }
0x1d8a   :  { %v2086_v6 = vmul.f32 %v2084_v63, %v2080_v1 }
0x1df7   :  { %v2077_v4 = vpop.permute.xlu0 %2076 }
0x1df8   :  { %v2079_v7 = vmul.f32 %v3291_v46, %v2077_v4 }
0x1dfa   :  { %v2087_v8 = vadd.f32 %v2086_v6, %v2079_v7 }
0x1dfc   :  { %v2097_v9 = vrot.slane %v2087_v8, %v3616_v29 }
0x1dfe   :  { %2098 = vrot.lane.b32.xlu1 %v2097_v9, %s3468_s20 }
0x1e70   :  { %v2099_v11 = vpop.permute.xlu1 %2098 }
0x1e71   :  { %3056 = vmatmul.mubr.msk.f32.vlgmr.msra.gmra.mrb[16].mxu0 %vm213_vm6, %v2099_v11 }
0x1e72   :  { %3201 = vmatpush1.bf16.msra.mxu0 %v3830_v42  ;;  %2351 = vmatprep.mubr.f32.mxu0 %v3461_v0 }
0x1e73   :  { %3203 = vmatprep.subr.bf16.mxu0 %v3832_v45 }
0x1e76   :  { %3205 = vmatpush1.bf16.msra.mxu0 %v3836_v60 }
0x1e77   :  { %3213 = vmatprep.subr.bf16.mxu0 %v3194_v34 }
0x1e79   :  { %2944 = vmatmul.mubr.msk.f32.vlgmr.msra.gmra.mrb[18].mxu0 %vm213_vm6, %v2099_v11 }
0x1e7a   :  { %2618 = vmatprep.mubr.f32.mxu0 %v3461_v0  ;;  %3215 = vmatpush1.bf16.msra.mxu0 %v3196_v37 }
0x1e7b   :  { %3224 = vmatprep.subr.bf16.mxu0 %v3466_v2 }
0x1f44   :  { %v2168_v13 = vpop.f32.mrb[16].mxu0 }
0x1f45   :  { %v2169_v14 = vadd.f32 %v2168_v13, %v2092_v12  ;;  %v3057_v15 = vpop.f32.mrb[17].mxu0 }
0x1f47   :  { %2172 = vst [vmem:[#allocation12 + $0x5] sm:$0x1] %v2169_v14  ;;  %v2173_v16 = vsel %vm429_vm7, %v2169_v14, -inf }
0x1f48   :  { %v2174_v17 = vsel %vm431_vm8, %v2173_v16, -inf }
0x1f49   :  { %2175 = vmax.xlane.f32.xlu0 %v2174_v17 }
0x1f4c   :  { %v2353_v19 = vpop.f32.mrb[18].mxu0 }
0x1f4d   :  { %v2355_v21 = vpop.f32.mrb[19].mxu0 }
0x1f4e   :  { %v2360_v23 = vcombine.low %v2353_v19, %v2355_v21 }
0x1f50   :  { %v2367_v49 = vrot.slane %v2360_v23, %v3622_v40 }
0x1f52   :  { %v2374_v52 = vrot.slane %v2367_v49, %v3622_v40 }
0x1f54   :  { %v2376_v56 = vadd.f32 %v2374_v52, %v2278_v54 }
0x1fd6   :  { %v2176_v24 = vpop.xlane.xlu0 %2175 }
0x1fd7   :  { %vm2177_vm1 = vcmp.eq.f32.partialorder %v2173_v16, %v2176_v24 }
0x1fd8   :  { %v2178_v26 = vsel %vm2177_vm1, %v3653_v20, 128 }
0x1fd9   :  { %v2179_v3 = vsel %vm431_vm8, %v2178_v26, 2147483647 }
0x1fda   :  { %v2181_v28 = vshra.s32 %v2179_v3, 16  ;;  %v2180_v27 = vand.u32 65535, %v2179_v3  ;;  %v2440_v3 = vld [vmem:[%s3994_s5] sm:$0x1] }
0x1fdc   :  { %v2183_v30 = vcvt.s32.f32 %v2181_v28  ;;  %v2182_v10 = vcvt.s32.f32 %v2180_v27 }
0x1fde   :  { %2184 = vmin.xlane.f32.xlu1 %v2183_v30 }
0x206b   :  { %v2185_v5 = vpop.xlane.xlu1 %2184 }
0x206c   :  { %vm2186_vm2 = vcmp.eq.f32.partialorder %v2183_v30, %v2185_v5  ;;  %v2191_v38 = vcvt.f32.s32 %v2185_v5 }
0x206d   :  { %v2187_v31 = vsel %vm2186_vm2, %v2182_v10, inf }
0x206e   :  { %2188 = vmin.xlane.f32.xlu0 %v2187_v31  ;;  %v2192_v41 = vshll.u32 %v2191_v38, 16 }
0x2084   :  { %2408 = vrot.lane.b32.xlu0 %v3866_v53, %s3468_s20 }
0x20fb   :  { %v2189_v39 = vpop.xlane.xlu0 %2188 }
0x20fc   :  { %v2190_v44 = vcvt.f32.s32 %v2189_v39 }
0x20fe   :  { %v2193_v46 = vadd.s32 %v2192_v41, %v2190_v44 }
0x20ff   :  { %v2409_v62 = vpop.permute.xlu0 %2408 }
0x2100   :  { %2194 = vst.msk [vmem:[%s3997_s8 + $0x5] sm:$0x1] %vm452_vm11, %v2193_v46  ;;  %v2195_v47 = vadd.s32 1, %v2193_v46 }
0x2102   :  { %vm2196_vm3 = vcmp.eq.s32.totalorder %v3653_v20, %v2195_v47 }
0x2103   :  { %v2942_v48 = vsel %vm2196_vm3, 1.0, %v3461_v0 }
0x2104   :  { %2943 = vmatmul.mubr.msk.f32.vlgmr.msra.gmra.mrb[18].mxu1 %vm462_vm12, %v2942_v48 }
0x2105   :  { %3208 = vmatpush3.bf16.msra.mxu1 %v3871_v22  ;;  %3066 = vmatprep.mubr.msk.f32.mxu1 %vm3467_vm5, %v3461_v0 }
0x2106   :  { %3209 = vmatprep.subr.bf16.mxu1 %v3466_v2 }
0x2109   :  { %3211 = vmatpush3.bf16.msra.mxu1 %v3874_v57 }
0x210a   :  { %3217 = vmatprep.subr.bf16.mxu1 %v3823_v43 }
0x21d7   :  { %v2272_v50 = vpop.f32.mrb[18].mxu1 }
0x21d8   :  { %v2274_v51 = vpop.f32.mrb[19].mxu1 }
0x21d9   :  { %v2379_v53 = vcombine.low %v2272_v50, %v2274_v51 }
0x21db   :  { %v2386_v18 = vrot.slane %v2379_v53, %v3622_v40 }
0x21dd   :  { %v2393_v55 = vrot.slane %v2386_v18, %v3622_v40 }
0x21df   :  { %v2395_v25 = vadd.f32 %v2393_v55, %v2376_v56  ;;  %v2626_v56 = vld [vmem:[#allocation2 + $0x7] ss:$8 sm:$0x3] }
0x21e1   :  { %2429 = vrot.lane.b32.xlu0 %v2395_v25, %s3464_s3  ;;  %v2945_v58 = vmul.f32 -1.442695, %v2395_v25  ;;  %v2403_v1 = vrot.slane %v2395_v25, 1 }
0x21e3   :  { %3296 = vpow2.f32 %v2945_v58 }
0x21ed   :  { %v3297_v59 = vpop.eup %3296 }
0x21ee   :  { %v2399_v43 = vadd.f32 1.0, %v3297_v59 }
0x21f0   :  { %3298 = vrcp.f32 %v2399_v43 }
0x21f1   :  { %3300 = vtanh.f32 %v2403_v1 }
0x21fa   :  { %v3299_v61 = vpop.eup %3298 }
0x21fb   :  { %v2411_v63 = vmul.f32 %v3299_v61, %v2409_v62  ;;  %v3301_v4 = vpop.eup %3300  ;;  %v2428_v16 = vsub.f32 1.0, %v3299_v61 }
0x21fc   :  { %v2406_v6 = vmul.f32 %v3301_v4, %v3299_v61 }
0x21fd   :  { %2413 = vrot.lane.b32.xlu1 %v2411_v63, %s3465_s16 }
0x2253   :  { %v2430_v13 = vpop.permute.xlu0 %2429 }
0x2254   :  { %v2431_v14 = vrot.slane %v2430_v13, 1 }
0x2256   :  { %v2432_v15 = vsel %vm199_vm4, %v2430_v13, %v2431_v14 }
0x2257   :  { %v2434_v19 = vmul.f32 %v2432_v15, %v2428_v16 }
0x226f   :  { %v2414_v7 = vpop.permute.xlu1 %2413 }
0x2270   :  { %v2416_v8 = vadd.f32 %v2414_v7, %v2406_v6 }
0x2272   :  { %3302 = vtanh.f32 %v2416_v8 }
0x227c   :  { %v3303_v9 = vpop.eup %3302 }
0x227d   :  { %2419 = vrot.lane.b32.xlu1 %v3303_v9, %s3464_s3 }
0x22ef   :  { %v2420_v11 = vpop.permute.xlu1 %2419 }
0x22f0   :  { %v2422_v12 = vmul.f32 %v3299_v61, %v2420_v11 }
0x22f2   :  { %2424 = vrot.lane.b32.xlu1 %v2422_v12, %s3468_s20 }
0x2364   :  { %v2425_v17 = vpop.permute.xlu1 %2424 }
0x2365   :  { %v2427_v21 = vmul.f32 %v3299_v61, %v2425_v17 }
0x2367   :  { %v2435_v23 = vadd.f32 %v2434_v19, %v2427_v21 }
0x2369   :  { %v2445_v24 = vrot.slane %v2435_v23, %v3616_v29  ;;  %v2788_v23 = vld [vmem:[%s3994_s5] sm:$0x1]  ;;  %s3469_s5 = smov [#allocation12]  }
0x236b   :  { %2446 = vrot.lane.b32.xlu0 %v2445_v24, %s3468_s20 }
0x23dd   :  { %v2447_v26 = vpop.permute.xlu0 %2446 }
0x23de   :  { %3067 = vmatmul.mubr.msk.f32.vlgmr.msra.gmra.mrb[20].mxu1 %vm213_vm6, %v2447_v26 }
0x23df   :  { %3219 = vmatpush1.bf16.msra.mxu1 %v3830_v42  ;;  %2699 = vmatprep.mubr.f32.mxu1 %v3461_v0 }
0x23e0   :  { %3221 = vmatprep.subr.bf16.mxu1 %v3832_v45 }
0x23e3   :  { %3223 = vmatpush1.bf16.msra.mxu1 %v3836_v60 }
0x23e6   :  { %2949 = vmatmul.mubr.msk.f32.vlgmr.msra.gmra.mrb[22].mxu1 %vm213_vm6, %v2447_v26 }
0x24b1   :  { %v2516_v28 = vpop.f32.mrb[20].mxu1 }
0x24b2   :  { %v2517_v30 = vadd.f32 %v2516_v28, %v2440_v3  ;;  %v3068_v27 = vpop.f32.mrb[21].mxu1 }
0x24b4   :  { %2520 = vst [vmem:[#allocation12 + $0x6] sm:$0x1] %v2517_v30  ;;  %v2521_v5 = vsel %vm429_vm7, %v2517_v30, -inf }
0x24b5   :  { %v2522_v42 = vsel %vm431_vm8, %v2521_v5, -inf }
0x24b6   :  { %2523 = vmax.xlane.f32.xlu1 %v2522_v42 }
0x24b9   :  { %v2701_v10 = vpop.f32.mrb[22].mxu1 }
0x24ba   :  { %v2703_v45 = vpop.f32.mrb[23].mxu1 }
0x24bb   :  { %v2708_v31 = vcombine.low %v2701_v10, %v2703_v45 }
0x24bd   :  { %v2715_v51 = vrot.slane %v2708_v31, %v3622_v40 }
0x24bf   :  { %v2722_v18 = vrot.slane %v2715_v51, %v3622_v40 }
0x24c1   :  { %v2724_v25 = vadd.f32 %v2722_v18, %v2626_v56 }
0x24c7   :  { %2756 = vrot.lane.b32.xlu1 %v2416_v8, %s3468_s20 }
0x2543   :  { %v2524_v60 = vpop.xlane.xlu1 %2523 }
0x2544   :  { %vm2525_vm9 = vcmp.eq.f32.partialorder %v2521_v5, %v2524_v60 }
0x2545   :  { %v2526_v32 = vsel %vm2525_vm9, %v3653_v20, 128 }
0x2546   :  { %v2527_v33 = vsel %vm431_vm8, %v2526_v32, 2147483647 }
0x2547   :  { %v2529_v34 = vshra.s32 %v2527_v33, 16  ;;  %v2528_v36 = vand.u32 65535, %v2527_v33  ;;  %v2757_v43 = vpop.permute.xlu1 %2756 }
0x2549   :  { %v2531_v35 = vcvt.s32.f32 %v2529_v34  ;;  %v2530_v38 = vcvt.s32.f32 %v2528_v36 }
0x254b   :  { %2532 = vmin.xlane.f32.xlu0 %v2531_v35 }
0x25d8   :  { %v2533_v37 = vpop.xlane.xlu0 %2532 }
0x25d9   :  { %vm2534_vm10 = vcmp.eq.f32.partialorder %v2531_v35, %v2533_v37  ;;  %v2539_v41 = vcvt.f32.s32 %v2533_v37 }
0x25da   :  { %v2535_v39 = vsel %vm2534_vm10, %v2530_v38, inf }
0x25db   :  { %2536 = vmin.xlane.f32.xlu0 %v2535_v39  ;;  %v2540_v46 = vshll.u32 %v2539_v41, 16 }
0x2668   :  { %v2537_v44 = vpop.xlane.xlu0 %2536 }
0x2669   :  { %v2538_v47 = vcvt.f32.s32 %v2537_v44 }
0x266b   :  { %v2541_v48 = vadd.s32 %v2540_v46, %v2538_v47 }
0x266d   :  { %2542 = vst.msk [vmem:[%s3997_s8 + $0x6] sm:$0x1] %vm452_vm11, %v2541_v48  ;;  %v2543_v49 = vadd.s32 1, %v2541_v48 }
0x266f   :  { %vm2544_vm13 = vcmp.eq.s32.totalorder %v3653_v20, %v2543_v49 }
0x2670   :  { %v2947_v50 = vsel %vm2544_vm13, 1.0, %v3461_v0 }
0x2671   :  { %2948 = vmatmul.mubr.msk.f32.vlgmr.msra.gmra.mrb[20].mxu0 %vm462_vm12, %v2947_v50 }
0x2672   :  { %3226 = vmatpush3.bf16.msra.mxu0 %v3871_v22  ;;  %3077 = vmatprep.mubr.msk.f32.mxu0 %vm3467_vm5, %v3461_v0 }
0x2673   :  { %3227 = vmatprep.subr.bf16.mxu0 %v3466_v2 }
0x2676   :  { %3229 = vmatpush3.bf16.msra.mxu0 %v3874_v57 }
0x2744   :  { %v2620_v52 = vpop.f32.mrb[20].mxu0 }
0x2745   :  { %v2622_v53 = vpop.f32.mrb[21].mxu0 }
0x2746   :  { %v2727_v54 = vcombine.low %v2620_v52, %v2622_v53 }
0x2748   :  { %v2734_v55 = vrot.slane %v2727_v54, %v3622_v40 }
0x274a   :  { %v2741_v22 = vrot.slane %v2734_v55, %v3622_v40 }
0x274c   :  { %v2743_v58 = vadd.f32 %v2741_v22, %v2724_v25 }
0x274e   :  { %v2950_v59 = vmul.f32 -1.442695, %v2743_v58  ;;  %v2751_v62 = vrot.slane %v2743_v58, 1 }
0x2750   :  { %3304 = vpow2.f32 %v2950_v59 }
0x275a   :  { %v3305_v0 = vpop.eup %3304 }
0x275b   :  { %v2747_v2 = vadd.f32 1.0, %v3305_v0 }
0x275d   :  { %3306 = vrcp.f32 %v2747_v2 }
0x275e   :  { %3308 = vtanh.f32 %v2751_v62 }
0x2767   :  { %v3307_v57 = vpop.eup %3306 }
0x2768   :  { %v2759_v61 = vmul.f32 %v3307_v57, %v2757_v43  ;;  %v3309_v63 = vpop.eup %3308  ;;  %v2776_v13 = vsub.f32 1.0, %v3307_v57 }
0x2769   :  { %v2754_v1 = vmul.f32 %v3309_v63, %v3307_v57 }
0x276a   :  { %2761 = vrot.lane.b32.xlu0 %v2759_v61, %s3465_s16 }
0x27dc   :  { %v2762_v4 = vpop.permute.xlu0 %2761 }
0x27dd   :  { %v2764_v6 = vadd.f32 %v2762_v4, %v2754_v1 }
0x27df   :  { %3310 = vtanh.f32 %v2764_v6 }
0x27e9   :  { %v3311_v7 = vpop.eup %3310 }
0x27ea   :  { %2767 = vrot.lane.b32.xlu1 %v3311_v7, %s3464_s3 }
0x27ee   :  { %2777 = vrot.lane.b32.xlu1 %v2743_v58, %s3464_s3 }
0x285c   :  { %v2768_v40 = vpop.permute.xlu1 %2767 }
0x285d   :  { %v2770_v8 = vmul.f32 %v3307_v57, %v2768_v40 }
0x285f   :  { %2772 = vrot.lane.b32.xlu0 %v2770_v8, %s3468_s20 }
0x2860   :  { %v2778_v9 = vpop.permute.xlu1 %2777 }
0x2861   :  { %v2779_v11 = vrot.slane %v2778_v9, 1 }
0x2863   :  { %v2780_v12 = vsel %vm199_vm4, %v2778_v9, %v2779_v11 }
0x2864   :  { %v2782_v15 = vmul.f32 %v2780_v12, %v2776_v13 }
0x28d1   :  { %v2773_v14 = vpop.permute.xlu0 %2772 }
0x28d2   :  { %v2775_v16 = vmul.f32 %v3307_v57, %v2773_v14 }
0x28d4   :  { %v2783_v17 = vadd.f32 %v2782_v15, %v2775_v16 }
0x28d6   :  { %v2793_v19 = vrot.slane %v2783_v17, %v3616_v29 }
0x28d8   :  { %2794 = vrot.lane.b32.xlu1 %v2793_v19, %s3468_s20  ;;  %s2897_s20 = sshll.u32 %s3469_s5, 4  ;;  %s2898_s20 = int_to_ptr.vmem [resolvable:$true] %s2897_s20 }
0x28d9   :  { %s3422_s27 = scalar_lea.vmem %s2898_s20, 128  ;;  %p3427_p13 = scmp.lt.s32.totalorder %s2898_s20, %s2898_s20 }
0x28da   :  { %p3423_p12 = scmp.ne.s32.totalorder %s2898_s20, %s3422_s27  ;;  %p3428_p0 = scmp.lt.s32.totalorder %s3422_s27, %s3422_s27 }
0x28dc   :  { %p3429_p1 = por %p3428_p0, %p3427_p13 }
0x28de   :  { %p3430_p2 = pnand %p3429_p1, %p3423_p12 }
0x294a   :  { %v2795_v21 = vpop.permute.xlu1 %2794 }
0x294b   :  { %3078 = vmatmul.mubr.msk.f32.vlgmr.msra.gmra.mrb[22].mxu0 %vm213_vm6, %v2795_v21 }
0x2a1e   :  { %v2864_v24 = vpop.f32.mrb[22].mxu0 }
0x2a1f   :  { %v2865_v26 = vadd.f32 %v2864_v24, %v2788_v23  ;;  %v3079_v3 = vpop.f32.mrb[23].mxu0 }
0x2a21   :  { %2868 = vst [vmem:[#allocation12 + $0x7] sm:$0x1] %v2865_v26  ;;  %v2869_v28 = vsel %vm429_vm7, %v2865_v26, -inf }
0x2a22   :  { %v2870_v30 = vsel %vm431_vm8, %v2869_v28, -inf }
0x2a23   :  { %2871 = vmax.xlane.f32.xlu0 %v2870_v30 }
0x2ab0   :  { %v2872_v29 = vpop.xlane.xlu0 %2871 }
0x2ab1   :  { %vm2873_vm4 = vcmp.eq.f32.partialorder %v2869_v28, %v2872_v29 }
0x2ab2   :  { %v2874_v27 = vsel %vm2873_vm4, %v3653_v20, 128 }
0x2ab3   :  { %v2875_v5 = vsel %vm431_vm8, %v2874_v27, 2147483647 }
0x2ab4   :  { %v2877_v42 = vshra.s32 %v2875_v5, 16  ;;  %v2876_v45 = vand.u32 65535, %v2875_v5 }
0x2ab6   :  { %v2879_v10 = vcvt.s32.f32 %v2877_v42  ;;  %v2878_v60 = vcvt.s32.f32 %v2876_v45 }
0x2ab8   :  { %2880 = vmin.xlane.f32.xlu1 %v2879_v10 }
0x2b45   :  { %v2881_v31 = vpop.xlane.xlu1 %2880 }
0x2b46   :  { %vm2882_vm5 = vcmp.eq.f32.partialorder %v2879_v10, %v2881_v31 }
0x2b47   :  { %v2883_v32 = vsel %vm2882_vm5, %v2878_v60, inf }
0x2b48   :  { %2884 = vmin.xlane.f32.xlu0 %v2883_v32 }
0x2b49   :  { %3433 = shalt.err (!%p3430_p2)
}
0x2b4a   :  { %s3434_s28 = scalar_lea.hbm %s3996_s7, 128 }
0x2b4b   :  { %p3435_p3 = scmp.ne.s32.totalorder %s3996_s7, %s3434_s28  ;;  %p3438_p4 = scmp.lt.u32.totalorder %s3434_s28, %s3996_s7 }
0x2b4d   :  { %p3440_p5 = pnand %p3438_p4, %p3435_p3 }
0x2b4f   :  { %3443 = shalt.err (!%p3440_p5)
}
0x2b50   :  { %2900 = dma.vmem_to_hbm [thread:$0]  %s2898_s20, 128, %s3996_s7, [#allocation5]   ;;  %v2887_v20 = vcvt.f32.s32 %v2881_v31 }
0x2b52   :  { %v2888_v34 = vshll.u32 %v2887_v20, 16 }
0x2bd5   :  { %v2885_v33 = vpop.xlane.xlu0 %2884 }
0x2bd6   :  { %v2886_v35 = vcvt.f32.s32 %v2885_v33 }
0x2bd8   :  { %v2889_v36 = vadd.s32 %v2888_v34, %v2886_v35 }
0x2bda   :  { %2890 = vst.msk [vmem:[%s3997_s8 + $0x7] sm:$0x1] %vm452_vm11, %v2889_v36 }
0x2bdb   :  { %3450 = dma.done.wait [#allocation5], 128  }
0x2bdc   :  { %3451 = vsyncadd [#allocation5], 4294967168 }
0x2bdd   :  { %2908 = vsyncpa [#allocation4], 1 }
0x2bde   :  { %2909 = vsyncpa [#allocation7], 1 }
0x2bdf   :  { %2910 = vsyncpa [#allocation10], 1 }
0x2be0   :  { %2911 = vsyncpa [#allocation5], 1 }

</bundles_post_ra>
